<compile_context>
chip_gen: v7x
topology: tpu7x:2x2x1
jax: 0.10.0
libtpu: 0.0.40
codegen_flags: <defaults>
</compile_context>

<pallas_src>
import functools
import math

import jax
import jax.numpy as jnp
import numpy as np
from jax import lax
from jax.experimental import pallas as pl
from jax.experimental.pallas import tpu as pltpu

EPS = 1e-6
LANE = 128


# ---------------------------------------------------------------------------
# Small helpers (wrapper side)
# ---------------------------------------------------------------------------
def _round_up(n, m):
    return (n + m - 1) // m * m


def _pick_tile(n):
    # Largest tile from a 128/256-friendly ladder that divides n (256-multiples first
    # for the v6e/v7x 2x256^2 MXU); fall back to the full dim for small shapes.
    for t in (512, 256, 128, 64, 32, 16, 8):
        if n % t == 0:
            return t
    return n


def _pad_last(x, c):
    pad = c - x.shape[-1]
    if pad == 0:
        return x
    return jnp.pad(x, [(0, 0)] * (x.ndim - 1) + [(0, pad)])


def _pad2(w, r, c):
    return jnp.pad(w, ((0, r - w.shape[0]), (0, c - w.shape[1])))


def _vmem_limit(resident_bytes):
    # Per-call scoped-VMEM budget from the actual per-grid-step resident footprint
    # (block shapes x buffer counts + scratch + intermediates), with 2x headroom for
    # compiler temps.  Floor keeps tiny shapes safe; cap stays well under v7x's 64 MiB.
    return int(min(48 << 20, max(16 << 20, 2 * int(resident_bytes) + (4 << 20))))


def _const_spec(shape, index_map):
    """BlockSpec for a constant-index operand: single-buffered (stays VMEM resident)."""
    try:
        return pl.BlockSpec(shape, index_map, pipeline_mode=pl.Buffered(1))
    except (TypeError, AttributeError):
        # Older jax without pipeline_mode / Buffered: fall back to default buffering.
        return pl.BlockSpec(shape, index_map)


def _norm_scale_shift(x, alpha, bias):
    """Per-feature scale/shift for the first Norm (stats of the raw input, plain JAX).

    Matches torch: mean/std over dims (0,1), unbiased std.  Returned as [1, Dp] f32 so
    the in-kernel norm is a single fused multiply-add per token tile.
    """
    n = x.shape[0] * x.shape[1]
    mean = jnp.mean(x, axis=(0, 1))                              # [Dp]
    var = jnp.sum((x - mean) ** 2, axis=(0, 1)) / jnp.float32(n - 1)
    scale = alpha[0] / (jnp.sqrt(var) + EPS)                     # [Dp]
    shift = bias[0] - mean * scale
    return scale.reshape(1, -1), shift.reshape(1, -1)


def _stats_scale_shift(stat_sum, stat_ssq, n, alpha, bias):
    """Combine per-tile partial (sum, sum-of-squares) emitted by the previous kernel.

    One-pass unbiased variance in f32; avoids re-reading the full activation from HBM.
    """
    psum = jnp.sum(stat_sum[:, :, 0, :], axis=(0, 1))            # [Dp]
    pssq = jnp.sum(stat_ssq[:, :, 0, :], axis=(0, 1))            # [Dp]
    mean = psum / n
    var = jnp.maximum(pssq - n * mean * mean, 0.0) / (n - 1.0)
    scale = alpha[0] / (jnp.sqrt(var) + EPS)
    shift = bias[0] - mean * scale
    return scale.reshape(1, -1), shift.reshape(1, -1)


# ---------------------------------------------------------------------------
# Pallas kernels
# ---------------------------------------------------------------------------
def _proj_qkv_kernel(x_ref, scale_ref, shift_ref,
                     wq_ref, bq_ref, wk_ref, bk_ref, wv_ref, bv_ref,
                     q_ref, k_ref, v_ref, *, sm_scale):
    """Self-attention projections: norm(x) once, then Q/K/V projections (bf16 out)."""
    f32, bf16 = jnp.float32, jnp.bfloat16
    xn = (x_ref[0] * scale_ref[...] + shift_ref[...]).astype(bf16)     # fused norm FMA
    q = jnp.dot(xn, wq_ref[...], preferred_element_type=f32) + bq_ref[...]
    q_ref[0] = (q * sm_scale).astype(bf16)      # fold 1/sqrt(d_model) into q
    k = jnp.dot(xn, wk_ref[...], preferred_element_type=f32) + bk_ref[...]
    k_ref[0] = k.astype(bf16)
    v = jnp.dot(xn, wv_ref[...], preferred_element_type=f32) + bv_ref[...]
    v_ref[0] = v.astype(bf16)


def _proj_q_kernel(x_ref, scale_ref, shift_ref, wq_ref, bq_ref, q_ref, *, sm_scale):
    """Query projection of norm(x) for cross-attention (bf16 out)."""
    f32, bf16 = jnp.float32, jnp.bfloat16
    xn = (x_ref[0] * scale_ref[...] + shift_ref[...]).astype(bf16)
    q = jnp.dot(xn, wq_ref[...], preferred_element_type=f32) + bq_ref[...]
    q_ref[0] = (q * sm_scale).astype(bf16)


def _proj_kv_kernel(src_ref, wk_ref, bk_ref, wv_ref, bv_ref, k_ref, v_ref):
    """K/V projections of a raw (un-normalized) bf16 source (cross-attention)."""
    f32, bf16 = jnp.float32, jnp.bfloat16
    s = src_ref[0]                                               # bf16 [T, Dp]
    k_ref[0] = (jnp.dot(s, wk_ref[...], preferred_element_type=f32)
                + bk_ref[...]).astype(bf16)
    v_ref[0] = (jnp.dot(s, wv_ref[...], preferred_element_type=f32)
                + bv_ref[...]).astype(bf16)


def _flash_attn_kernel(xres_ref, q_ref, k_ref, v_ref, wo_ref, bo_ref,
                       out_ref, sum_ref, ssq_ref, m_sc, l_sc, acc_sc):
    """Flash-style attention core over a (B, q-tile, kv-tile) grid.

    On the last kv step: output projection, residual add, and per-tile norm-stat
    partials (sum / sum-of-squares over tokens) for the next block's Norm.
    """
    f32, bf16 = jnp.float32, jnp.bfloat16
    ki = pl.program_id(2)

    @pl.when(ki == 0)
    def _():
        m_sc[...] = jnp.full_like(m_sc, -jnp.inf)
        l_sc[...] = jnp.zeros_like(l_sc)
        acc_sc[...] = jnp.zeros_like(acc_sc)

    q = q_ref[0]                                                 # bf16 [TQ, Dp], pre-scaled
    k = k_ref[0]                                                 # bf16 [TKV, Dp]
    v = v_ref[0]                                                 # bf16 [TKV, Dp]

    s = lax.dot_general(q, k, (((1,), (1,)), ((), ())),
                        preferred_element_type=f32)              # [TQ, TKV]

    m_prev = m_sc[...]
    m_new = jnp.maximum(m_prev, jnp.max(s, axis=-1, keepdims=True))
    alpha = jnp.exp(m_prev - m_new)
    p = jnp.exp(s - m_new)
    l_sc[...] = alpha * l_sc[...] + jnp.sum(p, axis=-1, keepdims=True)
    acc_sc[...] = alpha * acc_sc[...] + jnp.dot(p.astype(bf16), v,
                                                preferred_element_type=f32)
    m_sc[...] = m_new

    @pl.when(ki == pl.num_programs(2) - 1)
    def _():
        o = acc_sc[...] * pl.reciprocal(l_sc[...], approx=True)   # EUP reciprocal
        y = jnp.dot(o.astype(bf16), wo_ref[...],
                    preferred_element_type=f32) + bo_ref[...]
        res = xres_ref[0] + y                                     # residual add in f32
        out_ref[0] = res
        dp = res.shape[-1]
        part_sum = jnp.sum(res, axis=0, keepdims=True)            # [1, Dp]
        part_ssq = jnp.sum(res * res, axis=0, keepdims=True)      # [1, Dp]
        # Stats blocks are (8, Dp) for layout friendliness; wrapper reads row 0 only.
        sum_ref[0, 0] = jnp.broadcast_to(part_sum, (8, dp))
        ssq_ref[0, 0] = jnp.broadcast_to(part_ssq, (8, dp))


def _ffn_kernel(x_ref, scale_ref, shift_ref, w1_ref, b1_ref, w2_ref, b2_ref,
                out_ref, xn_sc, acc_sc):
    """FFN with the d_ff axis blocked: x + (relu(norm(x)@W1+b1) @ W2 + b2)."""
    f32, bf16 = jnp.float32, jnp.bfloat16
    fi = pl.program_id(1)

    @pl.when(fi == 0)
    def _():
        # Cache the normalized bf16 input once; zero the f32 accumulator.
        xn_sc[...] = (x_ref[...] * scale_ref[...] + shift_ref[...]).astype(bf16)
        acc_sc[...] = jnp.zeros_like(acc_sc)

    h = jnp.dot(xn_sc[...], w1_ref[...], preferred_element_type=f32) + b1_ref[...]
    h = jnp.maximum(h, 0.0).astype(bf16)                          # ReLU (dropout = id)
    acc_sc[...] = acc_sc[...] + jnp.dot(h, w2_ref[...], preferred_element_type=f32)

    @pl.when(fi == pl.num_programs(1) - 1)
    def _():
        out_ref[...] = x_ref[...] + acc_sc[...] + b2_ref[...]


# ---------------------------------------------------------------------------
# pallas_call wrappers
# ---------------------------------------------------------------------------
def _proj_qkv(x, scale, shift, wq, bq, wk, bk, wv, bv, *, sm_scale):
    B, S, Dp = x.shape
    T = _pick_tile(S)
    grid = (B, S // T)
    tile = lambda b, t: (b, t, 0)
    c2 = lambda b, t: (0, 0)

    resident = (2 * T * Dp * 4 + 3 * 2 * T * Dp * 2               # x in, q/k/v out
                + 3 * Dp * Dp * 2 + 5 * Dp * 4                    # weights, biases, norm
                + 3 * T * Dp * 4)                                 # f32 intermediates

    kernel = functools.partial(_proj_qkv_kernel, sm_scale=sm_scale)
    return pl.pallas_call(
        kernel,
        out_shape=(jax.ShapeDtypeStruct((B, S, Dp), jnp.bfloat16),
                   jax.ShapeDtypeStruct((B, S, Dp), jnp.bfloat16),
                   jax.ShapeDtypeStruct((B, S, Dp), jnp.bfloat16)),
        grid_spec=pltpu.PrefetchScalarGridSpec(
            num_scalar_prefetch=0, grid=grid,
            in_specs=[
                pl.BlockSpec((1, T, Dp), tile),                   # x tile (f32)
                _const_spec((1, Dp), c2), _const_spec((1, Dp), c2),   # norm scale/shift
                _const_spec((Dp, Dp), c2), _const_spec((1, Dp), c2),  # Wq, bq
                _const_spec((Dp, Dp), c2), _const_spec((1, Dp), c2),  # Wk, bk
                _const_spec((Dp, Dp), c2), _const_spec((1, Dp), c2),  # Wv, bv
            ],
            out_specs=[pl.BlockSpec((1, T, Dp), tile)] * 3,
        ),
        compiler_params=pltpu.CompilerParams(
            dimension_semantics=("parallel", "parallel"),
            vmem_limit_bytes=_vmem_limit(resident)),
    )(x, scale, shift, wq, bq, wk, bk, wv, bv)


def _proj_q(x, scale, shift, wq, bq, *, sm_scale):
    B, S, Dp = x.shape
    T = _pick_tile(S)
    grid = (B, S // T)
    tile = lambda b, t: (b, t, 0)
    c2 = lambda b, t: (0, 0)

    resident = (2 * T * Dp * 4 + 2 * T * Dp * 2
                + Dp * Dp * 2 + 3 * Dp * 4 + T * Dp * 4)

    kernel = functools.partial(_proj_q_kernel, sm_scale=sm_scale)
    return pl.pallas_call(
        kernel,
        out_shape=jax.ShapeDtypeStruct((B, S, Dp), jnp.bfloat16),
        grid_spec=pltpu.PrefetchScalarGridSpec(
            num_scalar_prefetch=0, grid=grid,
            in_specs=[
                pl.BlockSpec((1, T, Dp), tile),
                _const_spec((1, Dp), c2), _const_spec((1, Dp), c2),
                _const_spec((Dp, Dp), c2), _const_spec((1, Dp), c2),
            ],
            out_specs=pl.BlockSpec((1, T, Dp), tile),
        ),
        compiler_params=pltpu.CompilerParams(
            dimension_semantics=("parallel", "parallel"),
            vmem_limit_bytes=_vmem_limit(resident)),
    )(x, scale, shift, wq, bq)


def _proj_kv(src_bf16, wk, bk, wv, bv):
    B, Skv, Dp = src_bf16.shape
    T = _pick_tile(Skv)
    grid = (B, Skv // T)
    tile = lambda b, t: (b, t, 0)
    c2 = lambda b, t: (0, 0)

    resident = (2 * T * Dp * 2 + 2 * 2 * T * Dp * 2
                + 2 * Dp * Dp * 2 + 2 * Dp * 4 + 2 * T * Dp * 4)

    return pl.pallas_call(
        _proj_kv_kernel,
        out_shape=(jax.ShapeDtypeStruct((B, Skv, Dp), jnp.bfloat16),
                   jax.ShapeDtypeStruct((B, Skv, Dp), jnp.bfloat16)),
        grid_spec=pltpu.PrefetchScalarGridSpec(
            num_scalar_prefetch=0, grid=grid,
            in_specs=[
                pl.BlockSpec((1, T, Dp), tile),                   # kv source (bf16)
                _const_spec((Dp, Dp), c2), _const_spec((1, Dp), c2),  # Wk, bk
                _const_spec((Dp, Dp), c2), _const_spec((1, Dp), c2),  # Wv, bv
            ],
            out_specs=[pl.BlockSpec((1, T, Dp), tile)] * 2,
        ),
        compiler_params=pltpu.CompilerParams(
            dimension_semantics=("parallel", "parallel"),
            vmem_limit_bytes=_vmem_limit(resident)),
    )(src_bf16, wk, bk, wv, bv)


def _flash_attn(xres, q, k, v, wo, bo):
    B, S, Dp = xres.shape
    Skv = k.shape[1]
    TQ = _pick_tile(S)
    TKV = _pick_tile(Skv)
    nQ = S // TQ
    grid = (B, nQ, Skv // TKV)

    qmap = lambda b, qi, ki: (b, qi, 0)
    kmap = lambda b, qi, ki: (b, ki, 0)
    cmap = lambda b, qi, ki: (0, 0)
    smap = lambda b, qi, ki: (b, qi, 0, 0)

    resident = (2 * TQ * Dp * 4 + 2 * TQ * Dp * 2                 # residual, q
                + 2 * 2 * TKV * Dp * 2                            # k, v tiles
                + Dp * Dp * 2 + Dp * 4                            # Wo, bo (single buf)
                + 2 * TQ * Dp * 4 + 2 * 2 * 8 * Dp * 4            # out, stat partials
                + 2 * TQ * 4 + TQ * Dp * 4 + TQ * TKV * 4)        # scratch + scores

    out, ssum, sssq = pl.pallas_call(
        _flash_attn_kernel,
        out_shape=(jax.ShapeDtypeStruct((B, S, Dp), jnp.float32),
                   jax.ShapeDtypeStruct((B, nQ, 8, Dp), jnp.float32),
                   jax.ShapeDtypeStruct((B, nQ, 8, Dp), jnp.float32)),
        grid_spec=pltpu.PrefetchScalarGridSpec(
            num_scalar_prefetch=0, grid=grid,
            in_specs=[
                pl.BlockSpec((1, TQ, Dp), qmap),                  # residual x (f32)
                pl.BlockSpec((1, TQ, Dp), qmap),                  # q (bf16, pre-scaled)
                pl.BlockSpec((1, TKV, Dp), kmap),                 # k tile (bf16)
                pl.BlockSpec((1, TKV, Dp), kmap),                 # v tile (bf16)
                _const_spec((Dp, Dp), cmap),                      # Wo
                _const_spec((1, Dp), cmap),                       # bo
            ],
            out_specs=[pl.BlockSpec((1, TQ, Dp), qmap),
                       pl.BlockSpec((1, 1, 8, Dp), smap),
                       pl.BlockSpec((1, 1, 8, Dp), smap)],
            scratch_shapes=[pltpu.VMEM((TQ, 1), jnp.float32),     # m
                            pltpu.VMEM((TQ, 1), jnp.float32),     # l
                            pltpu.VMEM((TQ, Dp), jnp.float32)],   # acc
        ),
        compiler_params=pltpu.CompilerParams(
            dimension_semantics=("parallel", "parallel", "arbitrary"),
            vmem_limit_bytes=_vmem_limit(resident)),
    )(xres, q, k, v, wo, bo)
    return out, ssum, sssq


def _ffn_block(x2d, scale, shift, w1, b1, w2, b2):
    M, Dp = x2d.shape
    Fp = w1.shape[1]
    TM = _pick_tile(M)
    TF = _pick_tile(Fp)
    grid = (M // TM, Fp // TF)

    xmap = lambda i, fi: (i, 0)
    cmap = lambda i, fi: (0, 0)
    w1map = lambda i, fi: (0, fi)
    b1map = lambda i, fi: (0, fi)
    w2map = lambda i, fi: (fi, 0)

    resident = (2 * TM * Dp * 4 + 2 * TM * Dp * 4                 # x in / out
                + 2 * (Dp * TF + TF * Dp) * 2 + 2 * TF * 4        # W1/W2 tiles, b1
                + 3 * Dp * 4                                      # scale/shift/b2
                + TM * Dp * 2 + TM * Dp * 4 + TM * TF * 4)        # scratch + hidden

    return pl.pallas_call(
        _ffn_kernel,
        out_shape=jax.ShapeDtypeStruct((M, Dp), jnp.float32),
        grid_spec=pltpu.PrefetchScalarGridSpec(
            num_scalar_prefetch=0, grid=grid,
            in_specs=[
                pl.BlockSpec((TM, Dp), xmap),                     # x tokens (f32)
                _const_spec((1, Dp), cmap), _const_spec((1, Dp), cmap),  # norm
                pl.BlockSpec((Dp, TF), w1map), pl.BlockSpec((1, TF), b1map),  # W1, b1
                pl.BlockSpec((TF, Dp), w2map),                    # W2
                _const_spec((1, Dp), cmap),                       # b2
            ],
            out_specs=pl.BlockSpec((TM, Dp), xmap),
            scratch_shapes=[pltpu.VMEM((TM, Dp), jnp.bfloat16),   # cached norm(x)
                            pltpu.VMEM((TM, Dp), jnp.float32)],   # f32 accumulator
        ),
        compiler_params=pltpu.CompilerParams(
            dimension_semantics=("parallel", "arbitrary"),
            vmem_limit_bytes=_vmem_limit(resident)),
    )(x2d, scale, shift, w1, b1, w2, b2)


# ---------------------------------------------------------------------------
# Full decoder layer
# ---------------------------------------------------------------------------
def decoder_layer(x, e_outputs, trg_mask, params):
    """Fused DecoderLayer forward. trg_mask is unused (matches the reference forward)."""
    del trg_mask
    (a1, nb1, a2, nb2, a3, nb3,
     wq1, bq1, wk1, bk1, wv1, bv1, wo1, bo1,
     wq2, bq2, wk2, bk2, wv2, bv2, wo2, bo2,
     wf1, bf1, wf2, bf2) = params

    B, S, D = x.shape
    d_ff = wf1.shape[1]
    Dp = _round_up(D, LANE)
    Fp = _round_up(d_ff, LANE)
    sm_scale = 1.0 / math.sqrt(D)            # true d_model, not padded width
    n_tok = float(B * S)

    bf16 = jnp.bfloat16

    # Lane-dense padded layouts.  Weights -> bf16 (MXU fast path, half the VMEM);
    # activations / biases / norm params stay f32; cross-attn kv source carried bf16.
    xp = _pad_last(x.astype(jnp.float32), Dp)
    ep_bf16 = _pad_last(e_outputs, Dp).astype(bf16)

    pw = lambda w, r, c: _pad2(w, r, c).astype(bf16)
    pb = lambda b, c: _pad_last(b, c).astype(jnp.float32)

    wq1p, wk1p, wv1p, wo1p = (pw(w, Dp, Dp) for w in (wq1, wk1, wv1, wo1))
    wq2p, wk2p, wv2p, wo2p = (pw(w, Dp, Dp) for w in (wq2, wk2, wv2, wo2))
    bq1p, bk1p, bv1p, bo1p = (pb(b, Dp) for b in (bq1, bk1, bv1, bo1))
    bq2p, bk2p, bv2p, bo2p = (pb(b, Dp) for b in (bq2, bk2, bv2, bo2))
    wf1p, bf1p = pw(wf1, Dp, Fp), pb(bf1, Fp)
    wf2p, bf2p = pw(wf2, Fp, Dp), pb(bf2, Dp)
    a1p, a2p, a3p = (pb(a, Dp) for a in (a1, a2, a3))
    nb1p, nb2p, nb3p = (pb(b, Dp) for b in (nb1, nb2, nb3))

    # ---- Block 1: self-attention (K/V = normalized x) --------------------------------
    sc1, sh1 = _norm_scale_shift(xp, a1p, nb1p)                   # stats of the raw input
    q1, k1, v1 = _proj_qkv(xp, sc1, sh1, wq1p, bq1p, wk1p, bk1p, wv1p, bv1p,
                           sm_scale=sm_scale)
    xp, ssum, sssq = _flash_attn(xp, q1, k1, v1, wo1p, bo1p)

    # ---- Block 2: cross-attention (K/V = raw encoder outputs, bf16) ------------------
    sc2, sh2 = _stats_scale_shift(ssum, sssq, n_tok, a2p, nb2p)   # fused stat partials
    q2 = _proj_q(xp, sc2, sh2, wq2p, bq2p, sm_scale=sm_scale)
    k2, v2 = _proj_kv(ep_bf16, wk2p, bk2p, wv2p, bv2p)
    xp, ssum, sssq = _flash_attn(xp, q2, k2, v2, wo2p, bo2p)

    # ---- Block 3: feed-forward on the flattened (B*S, Dp) layout ----------------------
    sc3, sh3 = _stats_scale_shift(ssum, sssq, n_tok, a3p, nb3p)
    xf = _ffn_block(xp.reshape(B * S, Dp), sc3, sh3, wf1p, bf1p, wf2p, bf2p)
    out = xf.reshape(B, S, Dp)

    return out[..., :D].astype(x.dtype)


# ---------------------------------------------------------------------------
# Deterministic parameter construction
# ---------------------------------------------------------------------------
def make_params(key, d_model, d_ff):
    keys = jax.random.split(key, 20)
    k = iter(keys)

    def lin(kk, fan_in, fan_out):
        scale = 1.0 / np.sqrt(fan_in)
        w = jax.random.uniform(kk, (fan_in, fan_out), jnp.float32, -scale, scale)
        b = jnp.zeros((1, fan_out), jnp.float32)
        return w, b

    a1 = jnp.ones((1, d_model), jnp.float32); nb1 = jnp.zeros((1, d_model), jnp.float32)
    a2 = jnp.ones((1, d_model), jnp.float32); nb2 = jnp.zeros((1, d_model), jnp.float32)
    a3 = jnp.ones((1, d_model), jnp.float32); nb3 = jnp.zeros((1, d_model), jnp.float32)

    wq1, bq1 = lin(next(k), d_model, d_model)
    wk1, bk1 = lin(next(k), d_model, d_model)
    wv1, bv1 = lin(next(k), d_model, d_model)
    wo1, bo1 = lin(next(k), d_model, d_model)
    wq2, bq2 = lin(next(k), d_model, d_model)
    wk2, bk2 = lin(next(k), d_model, d_model)
    wv2, bv2 = lin(next(k), d_model, d_model)
    wo2, bo2 = lin(next(k), d_model, d_model)

    wf1, bf1 = lin(next(k), d_model, d_ff)
    wf2, bf2 = lin(next(k), d_ff, d_model)
    # Non-zero biases so the test is non-trivial.
    bq1 = 0.01 * jax.random.normal(next(k), (1, d_model), jnp.float32)
    bo1 = 0.01 * jax.random.normal(next(k), (1, d_model), jnp.float32)
    bf1 = 0.01 * jax.random.normal(next(k), (1, d_ff), jnp.float32)
    bf2 = 0.01 * jax.random.normal(next(k), (1, d_model), jnp.float32)

    return (a1, nb1, a2, nb2, a3, nb3,
            wq1, bq1, wk1, bk1, wv1, bv1, wo1, bo1,
            wq2, bq2, wk2, bk2, wv2, bv2, wo2, bo2,
            wf1, bf1, wf2, bf2)


# ---------------------------------------------------------------------------
# Pure-JAX f32 reference (mirrors the PyTorch forward) for correctness check
# ---------------------------------------------------------------------------
def decoder_layer_ref(x, e, params):
    (a1, nb1, a2, nb2, a3, nb3,
     wq1, bq1, wk1, bk1, wv1, bv1, wo1, bo1,
     wq2, bq2, wk2, bk2, wv2, bv2, wo2, bo2,
     wf1, bf1, wf2, bf2) = params

    def norm(x, a, b):
        n = x.shape[0] * x.shape[1]
        mean = jnp.mean(x, axis=(0, 1), keepdims=True)
        std = jnp.sqrt(jnp.sum((x - mean) ** 2, axis=(0, 1), keepdims=True) / (n - 1))
        return a * (x - mean) / (std + EPS) + b

    def attn(xq, xkv, wq, bq, wk, bk, wv, bv, wo, bo):
        q = xq @ wq + bq
        kk = xkv @ wk + bk
        v = xkv @ wv + bv
        s = jnp.einsum('bqd,bkd->bqk', q, kk) / jnp.sqrt(jnp.float32(xq.shape[-1]))
        p = jax.nn.softmax(s, axis=-1)
        return jnp.einsum('bqk,bkd->bqd', p, v) @ wo + bo

    x2 = norm(x, a1, nb1)
    x = x + attn(x2, x2, wq1, bq1, wk1, bk1, wv1, bv1, wo1, bo1)
    x2 = norm(x, a2, nb2)
    x = x + attn(x2, e, wq2, bq2, wk2, bk2, wv2, bv2, wo2, bo2)
    x2 = norm(x, a3, nb3)
    x = x + (jnp.maximum(x2 @ wf1 + bf1, 0.0) @ wf2 + bf2)
    return x


if __name__ == "__main__":
    B, S, D, D_FF = 2, 8, 32, 64

    key = jax.random.PRNGKey(0)
    kx, ke, kp = jax.random.split(key, 3)
    x = jax.random.normal(kx, (B, S, D), jnp.float32)
    e_outputs = jax.random.normal(ke, (B, S, D), jnp.float32)
    trg_mask = jnp.ones((B, S, S), jnp.float32)   # unused by the reference forward
    params = make_params(kp, D, D_FF)

    out = jax.jit(decoder_layer)(x, e_outputs, trg_mask, params)
    out = jax.block_until_ready(out)

    ref = decoder_layer_ref(x, e_outputs, params)
    assert out.shape == (B, S, D)
    # Tolerance reflects bf16 MXU inputs (f32 accumulation) + approx EUP reciprocal in
    # the softmax; norm statistics, softmax stats and residuals are kept in f32.
    assert np.allclose(np.asarray(out), np.asarray(ref), atol=3e-2, rtol=3e-2), \
        "Pallas kernel output does not match JAX reference"

    print("KERNEL_OK")
</pallas_src>

<mosaic_0001>
module attributes {stable_mosaic.version = 11 : i64} {
  func.func @_proj_qkv_kernel(%arg0: i32, %arg1: i32, %arg2: memref<1x8x128xf32, #tpu.memory_space<vmem>>, %arg3: memref<1x128xf32, #tpu.memory_space<vmem>>, %arg4: memref<1x128xf32, #tpu.memory_space<vmem>>, %arg5: memref<128x128xbf16, #tpu.memory_space<vmem>>, %arg6: memref<1x128xf32, #tpu.memory_space<vmem>>, %arg7: memref<128x128xbf16, #tpu.memory_space<vmem>>, %arg8: memref<1x128xf32, #tpu.memory_space<vmem>>, %arg9: memref<128x128xbf16, #tpu.memory_space<vmem>>, %arg10: memref<1x128xf32, #tpu.memory_space<vmem>>, %arg11: memref<1x8x128xbf16, #tpu.memory_space<vmem>>, %arg12: memref<1x8x128xbf16, #tpu.memory_space<vmem>>, %arg13: memref<1x8x128xbf16, #tpu.memory_space<vmem>>) attributes {dimension_semantics = [#tpu.dimension_semantics<parallel>, #tpu.dimension_semantics<parallel>], iteration_bounds = array<i64: 2, 1>, scalar_prefetch = 0 : i64, scratch_operands = 0 : i64, tpu.core_type = #tpu.core_type<tc>, window_params = [{transform_indices = @transform_0, window_bounds = array<i64: 1, 8, 128>}, {pipeline_mode = #tpu.pipeline_mode<synchronous>, transform_indices = @transform_1, window_bounds = array<i64: 1, 128>}, {pipeline_mode = #tpu.pipeline_mode<synchronous>, transform_indices = @transform_2, window_bounds = array<i64: 1, 128>}, {pipeline_mode = #tpu.pipeline_mode<synchronous>, transform_indices = @transform_3, window_bounds = array<i64: 128, 128>}, {pipeline_mode = #tpu.pipeline_mode<synchronous>, transform_indices = @transform_4, window_bounds = array<i64: 1, 128>}, {pipeline_mode = #tpu.pipeline_mode<synchronous>, transform_indices = @transform_5, window_bounds = array<i64: 128, 128>}, {pipeline_mode = #tpu.pipeline_mode<synchronous>, transform_indices = @transform_6, window_bounds = array<i64: 1, 128>}, {pipeline_mode = #tpu.pipeline_mode<synchronous>, transform_indices = @transform_7, window_bounds = array<i64: 128, 128>}, {pipeline_mode = #tpu.pipeline_mode<synchronous>, transform_indices = @transform_8, window_bounds = array<i64: 1, 128>}, {transform_indices = @transform_9, window_bounds = array<i64: 1, 8, 128>}, {transform_indices = @transform_10, window_bounds = array<i64: 1, 8, 128>}, {transform_indices = @transform_11, window_bounds = array<i64: 1, 8, 128>}]} {
    %c0 = arith.constant 0 : index
    %c0_0 = arith.constant 0 : index
    %c0_1 = arith.constant 0 : index
    %0 = vector.load %arg2[%c0, %c0_0, %c0_1] : memref<1x8x128xf32, #tpu.memory_space<vmem>>, vector<1x8x128xf32>
    %1 = vector.shape_cast %0 : vector<1x8x128xf32> to vector<8x128xf32>
    %c0_2 = arith.constant 0 : index
    %c0_3 = arith.constant 0 : index
    %2 = vector.load %arg3[%c0_2, %c0_3] : memref<1x128xf32, #tpu.memory_space<vmem>>, vector<1x128xf32>
    %3 = vector.broadcast %2 : vector<1x128xf32> to vector<8x128xf32>
    %4 = arith.mulf %1, %3 : vector<8x128xf32>
    %c0_4 = arith.constant 0 : index
    %c0_5 = arith.constant 0 : index
    %5 = vector.load %arg4[%c0_4, %c0_5] : memref<1x128xf32, #tpu.memory_space<vmem>>, vector<1x128xf32>
    %6 = vector.broadcast %5 : vector<1x128xf32> to vector<8x128xf32>
    %7 = arith.addf %4, %6 : vector<8x128xf32>
    %8 = arith.truncf %7 : vector<8x128xf32> to vector<8x128xbf16>
    %c0_6 = arith.constant 0 : index
    %c0_7 = arith.constant 0 : index
    %9 = vector.load %arg5[%c0_6, %c0_7] : memref<128x128xbf16, #tpu.memory_space<vmem>>, vector<128x128xbf16>
    %cst = arith.constant dense<0.000000e+00> : vector<8x128xf32>
    %10 = tpu.matmul %8, %9, %cst {dimension_numbers = #tpu.dot_dimension_numbers<[1], [0], [0], [1], [0, 0, 1, 1], [], []>} : vector<8x128xbf16>, vector<128x128xbf16>, vector<8x128xf32> -> vector<8x128xf32>
    %c0_8 = arith.constant 0 : index
    %c0_9 = arith.constant 0 : index
    %11 = vector.load %arg6[%c0_8, %c0_9] : memref<1x128xf32, #tpu.memory_space<vmem>>, vector<1x128xf32>
    %12 = vector.broadcast %11 : vector<1x128xf32> to vector<8x128xf32>
    %13 = arith.addf %10, %12 : vector<8x128xf32>
    %cst_10 = arith.constant 0.176776692 : f32
    %14 = vector.broadcast %cst_10 : f32 to vector<8x128xf32>
    %15 = arith.mulf %13, %14 : vector<8x128xf32>
    %16 = arith.truncf %15 : vector<8x128xf32> to vector<8x128xbf16>
    %c0_11 = arith.constant 0 : index
    %c0_12 = arith.constant 0 : index
    %c0_13 = arith.constant 0 : index
    %17 = vector.load %arg11[%c0_11, %c0_12, %c0_13] : memref<1x8x128xbf16, #tpu.memory_space<vmem>>, vector<1x8x128xbf16>
    %18 = vector.shape_cast %17 : vector<1x8x128xbf16> to vector<8x128xbf16>
    %19 = vector.shape_cast %16 : vector<8x128xbf16> to vector<1x8x128xbf16>
    tpu.vector_store %arg11[%c0_11, %c0_12, %c0_13], %19 {strides = array<i32>} : memref<1x8x128xbf16, #tpu.memory_space<vmem>>, vector<1x8x128xbf16>,
    %c0_14 = arith.constant 0 : index
    %c0_15 = arith.constant 0 : index
    %20 = vector.load %arg7[%c0_14, %c0_15] : memref<128x128xbf16, #tpu.memory_space<vmem>>, vector<128x128xbf16>
    %cst_16 = arith.constant dense<0.000000e+00> : vector<8x128xf32>
    %21 = tpu.matmul %8, %20, %cst_16 {dimension_numbers = #tpu.dot_dimension_numbers<[1], [0], [0], [1], [0, 0, 1, 1], [], []>} : vector<8x128xbf16>, vector<128x128xbf16>, vector<8x128xf32> -> vector<8x128xf32>
    %c0_17 = arith.constant 0 : index
    %c0_18 = arith.constant 0 : index
    %22 = vector.load %arg8[%c0_17, %c0_18] : memref<1x128xf32, #tpu.memory_space<vmem>>, vector<1x128xf32>
    %23 = vector.broadcast %22 : vector<1x128xf32> to vector<8x128xf32>
    %24 = arith.addf %21, %23 : vector<8x128xf32>
    %25 = arith.truncf %24 : vector<8x128xf32> to vector<8x128xbf16>
    %c0_19 = arith.constant 0 : index
    %c0_20 = arith.constant 0 : index
    %c0_21 = arith.constant 0 : index
    %26 = vector.load %arg12[%c0_19, %c0_20, %c0_21] : memref<1x8x128xbf16, #tpu.memory_space<vmem>>, vector<1x8x128xbf16>
    %27 = vector.shape_cast %26 : vector<1x8x128xbf16> to vector<8x128xbf16>
    %28 = vector.shape_cast %25 : vector<8x128xbf16> to vector<1x8x128xbf16>
    tpu.vector_store %arg12[%c0_19, %c0_20, %c0_21], %28 {strides = array<i32>} : memref<1x8x128xbf16, #tpu.memory_space<vmem>>, vector<1x8x128xbf16>,
    %c0_22 = arith.constant 0 : index
    %c0_23 = arith.constant 0 : index
    %29 = vector.load %arg9[%c0_22, %c0_23] : memref<128x128xbf16, #tpu.memory_space<vmem>>, vector<128x128xbf16>
    %cst_24 = arith.constant dense<0.000000e+00> : vector<8x128xf32>
    %30 = tpu.matmul %8, %29, %cst_24 {dimension_numbers = #tpu.dot_dimension_numbers<[1], [0], [0], [1], [0, 0, 1, 1], [], []>} : vector<8x128xbf16>, vector<128x128xbf16>, vector<8x128xf32> -> vector<8x128xf32>
    %c0_25 = arith.constant 0 : index
    %c0_26 = arith.constant 0 : index
    %31 = vector.load %arg10[%c0_25, %c0_26] : memref<1x128xf32, #tpu.memory_space<vmem>>, vector<1x128xf32>
    %32 = vector.broadcast %31 : vector<1x128xf32> to vector<8x128xf32>
    %33 = arith.addf %30, %32 : vector<8x128xf32>
    %34 = arith.truncf %33 : vector<8x128xf32> to vector<8x128xbf16>
    %c0_27 = arith.constant 0 : index
    %c0_28 = arith.constant 0 : index
    %c0_29 = arith.constant 0 : index
    %35 = vector.load %arg13[%c0_27, %c0_28, %c0_29] : memref<1x8x128xbf16, #tpu.memory_space<vmem>>, vector<1x8x128xbf16>
    %36 = vector.shape_cast %35 : vector<1x8x128xbf16> to vector<8x128xbf16>
    %37 = vector.shape_cast %34 : vector<8x128xbf16> to vector<1x8x128xbf16>
    tpu.vector_store %arg13[%c0_27, %c0_28, %c0_29], %37 {strides = array<i32>} : memref<1x8x128xbf16, #tpu.memory_space<vmem>>, vector<1x8x128xbf16>,
    return
  }
  func.func @transform_0(%arg0: i32, %arg1: i32) -> (i32, i32, i32) {
    %c0_i32 = arith.constant 0 : i32
    %c0_i32_0 = arith.constant 0 : i32
    return %arg0, %arg1, %c0_i32 : i32, i32, i32
  }
  func.func @transform_1(%arg0: i32, %arg1: i32) -> (i32, i32) {
    %c0_i32 = arith.constant 0 : i32
    %c0_i32_0 = arith.constant 0 : i32
    %c0_i32_1 = arith.constant 0 : i32
    return %c0_i32, %c0_i32_0 : i32, i32
  }
  func.func @transform_2(%arg0: i32, %arg1: i32) -> (i32, i32) {
    %c0_i32 = arith.constant 0 : i32
    %c0_i32_0 = arith.constant 0 : i32
    %c0_i32_1 = arith.constant 0 : i32
    return %c0_i32, %c0_i32_0 : i32, i32
  }
  func.func @transform_3(%arg0: i32, %arg1: i32) -> (i32, i32) {
    %c0_i32 = arith.constant 0 : i32
    %c0_i32_0 = arith.constant 0 : i32
    %c0_i32_1 = arith.constant 0 : i32
    return %c0_i32, %c0_i32_0 : i32, i32
  }
  func.func @transform_4(%arg0: i32, %arg1: i32) -> (i32, i32) {
    %c0_i32 = arith.constant 0 : i32
    %c0_i32_0 = arith.constant 0 : i32
    %c0_i32_1 = arith.constant 0 : i32
    return %c0_i32, %c0_i32_0 : i32, i32
  }
  func.func @transform_5(%arg0: i32, %arg1: i32) -> (i32, i32) {
    %c0_i32 = arith.constant 0 : i32
    %c0_i32_0 = arith.constant 0 : i32
    %c0_i32_1 = arith.constant 0 : i32
    return %c0_i32, %c0_i32_0 : i32, i32
  }
  func.func @transform_6(%arg0: i32, %arg1: i32) -> (i32, i32) {
    %c0_i32 = arith.constant 0 : i32
    %c0_i32_0 = arith.constant 0 : i32
    %c0_i32_1 = arith.constant 0 : i32
    return %c0_i32, %c0_i32_0 : i32, i32
  }
  func.func @transform_7(%arg0: i32, %arg1: i32) -> (i32, i32) {
    %c0_i32 = arith.constant 0 : i32
    %c0_i32_0 = arith.constant 0 : i32
    %c0_i32_1 = arith.constant 0 : i32
    return %c0_i32, %c0_i32_0 : i32, i32
  }
  func.func @transform_8(%arg0: i32, %arg1: i32) -> (i32, i32) {
    %c0_i32 = arith.constant 0 : i32
    %c0_i32_0 = arith.constant 0 : i32
    %c0_i32_1 = arith.constant 0 : i32
    return %c0_i32, %c0_i32_0 : i32, i32
  }
  func.func @transform_9(%arg0: i32, %arg1: i32) -> (i32, i32, i32) {
    %c0_i32 = arith.constant 0 : i32
    %c0_i32_0 = arith.constant 0 : i32
    return %arg0, %arg1, %c0_i32 : i32, i32, i32
  }
  func.func @transform_10(%arg0: i32, %arg1: i32) -> (i32, i32, i32) {
    %c0_i32 = arith.constant 0 : i32
    %c0_i32_0 = arith.constant 0 : i32
    return %arg0, %arg1, %c0_i32 : i32, i32, i32
  }
  func.func @transform_11(%arg0: i32, %arg1: i32) -> (i32, i32, i32) {
    %c0_i32 = arith.constant 0 : i32
    %c0_i32_0 = arith.constant 0 : i32
    return %arg0, %arg1, %c0_i32 : i32, i32, i32
  }
}

module attributes {stable_mosaic.version = 11 : i64} {
  func.func @_flash_attn_kernel(%arg0: i32, %arg1: i32, %arg2: i32, %arg3: memref<1x8x128xf32, #tpu.memory_space<vmem>>, %arg4: memref<1x8x128xbf16, #tpu.memory_space<vmem>>, %arg5: memref<1x8x128xbf16, #tpu.memory_space<vmem>>, %arg6: memref<1x8x128xbf16, #tpu.memory_space<vmem>>, %arg7: memref<128x128xbf16, #tpu.memory_space<vmem>>, %arg8: memref<1x128xf32, #tpu.memory_space<vmem>>, %arg9: memref<1x8x128xf32, #tpu.memory_space<vmem>>, %arg10: memref<1x1x8x128xf32, #tpu.memory_space<vmem>>, %arg11: memref<1x1x8x128xf32, #tpu.memory_space<vmem>>, %arg12: memref<8x1xf32, #tpu.memory_space<vmem>>, %arg13: memref<8x1xf32, #tpu.memory_space<vmem>>, %arg14: memref<8x128xf32, #tpu.memory_space<vmem>>) attributes {dimension_semantics = [#tpu.dimension_semantics<parallel>, #tpu.dimension_semantics<parallel>, #tpu.dimension_semantics<arbitrary>], iteration_bounds = array<i64: 2, 1, 1>, scalar_prefetch = 0 : i64, scratch_operands = 3 : i64, tpu.core_type = #tpu.core_type<tc>, window_params = [{transform_indices = @transform_0, window_bounds = array<i64: 1, 8, 128>}, {transform_indices = @transform_1, window_bounds = array<i64: 1, 8, 128>}, {transform_indices = @transform_2, window_bounds = array<i64: 1, 8, 128>}, {transform_indices = @transform_3, window_bounds = array<i64: 1, 8, 128>}, {pipeline_mode = #tpu.pipeline_mode<synchronous>, transform_indices = @transform_4, window_bounds = array<i64: 128, 128>}, {pipeline_mode = #tpu.pipeline_mode<synchronous>, transform_indices = @transform_5, window_bounds = array<i64: 1, 128>}, {transform_indices = @transform_6, window_bounds = array<i64: 1, 8, 128>}, {transform_indices = @transform_7, window_bounds = array<i64: 1, 1, 8, 128>}, {transform_indices = @transform_8, window_bounds = array<i64: 1, 1, 8, 128>}]} {
    %c0_i32 = arith.constant 0 : i32
    %0 = arith.cmpi eq, %arg2, %c0_i32 : i32
    %1 = arith.extui %0 : i1 to i32
    %c0_i32_0 = arith.constant 0 : i32
    %2 = arith.cmpi ne, %1, %c0_i32_0 : i32
    scf.if %2 {
      %cst_26 = arith.constant 0xFF800000 : f32
      %36 = vector.broadcast %cst_26 : f32 to vector<8x1xf32>
      %c0_27 = arith.constant 0 : index
      %c0_28 = arith.constant 0 : index
      %37 = vector.load %arg12[%c0_27, %c0_28] : memref<8x1xf32, #tpu.memory_space<vmem>>, vector<8x1xf32>
      tpu.vector_store %arg12[%c0_27, %c0_28], %36 {strides = array<i32>} : memref<8x1xf32, #tpu.memory_space<vmem>>, vector<8x1xf32>,
      %cst_29 = arith.constant 0.000000e+00 : f32
      %38 = vector.broadcast %cst_29 : f32 to vector<8x1xf32>
      %c0_30 = arith.constant 0 : index
      %c0_31 = arith.constant 0 : index
      %39 = vector.load %arg13[%c0_30, %c0_31] : memref<8x1xf32, #tpu.memory_space<vmem>>, vector<8x1xf32>
      tpu.vector_store %arg13[%c0_30, %c0_31], %38 {strides = array<i32>} : memref<8x1xf32, #tpu.memory_space<vmem>>, vector<8x1xf32>,
      %cst_32 = arith.constant 0.000000e+00 : f32
      %40 = vector.broadcast %cst_32 : f32 to vector<8x128xf32>
      %c0_33 = arith.constant 0 : index
      %c0_34 = arith.constant 0 : index
      %41 = vector.load %arg14[%c0_33, %c0_34] : memref<8x128xf32, #tpu.memory_space<vmem>>, vector<8x128xf32>
      tpu.vector_store %arg14[%c0_33, %c0_34], %40 {strides = array<i32>} : memref<8x128xf32, #tpu.memory_space<vmem>>, vector<8x128xf32>,
    } else {
    }
    %c0 = arith.constant 0 : index
    %c0_1 = arith.constant 0 : index
    %c0_2 = arith.constant 0 : index
    %3 = vector.load %arg4[%c0, %c0_1, %c0_2] : memref<1x8x128xbf16, #tpu.memory_space<vmem>>, vector<1x8x128xbf16>
    %4 = vector.shape_cast %3 : vector<1x8x128xbf16> to vector<8x128xbf16>
    %c0_3 = arith.constant 0 : index
    %c0_4 = arith.constant 0 : index
    %c0_5 = arith.constant 0 : index
    %5 = vector.load %arg5[%c0_3, %c0_4, %c0_5] : memref<1x8x128xbf16, #tpu.memory_space<vmem>>, vector<1x8x128xbf16>
    %6 = vector.shape_cast %5 : vector<1x8x128xbf16> to vector<8x128xbf16>
    %c0_6 = arith.constant 0 : index
    %c0_7 = arith.constant 0 : index
    %c0_8 = arith.constant 0 : index
    %7 = vector.load %arg6[%c0_6, %c0_7, %c0_8] : memref<1x8x128xbf16, #tpu.memory_space<vmem>>, vector<1x8x128xbf16>
    %8 = vector.shape_cast %7 : vector<1x8x128xbf16> to vector<8x128xbf16>
    %cst = arith.constant dense<0.000000e+00> : vector<8x8xf32>
    %9 = tpu.matmul %4, %6, %cst {dimension_numbers = #tpu.dot_dimension_numbers<[1], [1], [0], [0], [0, 0, 1, 0], [], []>} : vector<8x128xbf16>, vector<8x128xbf16>, vector<8x8xf32> -> vector<8x8xf32>
    %c0_9 = arith.constant 0 : index
    %c0_10 = arith.constant 0 : index
    %10 = vector.load %arg12[%c0_9, %c0_10] : memref<8x1xf32, #tpu.memory_space<vmem>>, vector<8x1xf32>
    %cst_11 = arith.constant dense<0xFF800000> : vector<8xf32>
    %11 = vector.multi_reduction <maximumf>, %9, %cst_11 [1] : vector<8x8xf32> to vector<8xf32>
    %12 = vector.shape_cast %11 : vector<8xf32> to vector<8x1xf32>
    %13 = arith.maximumf %10, %12 : vector<8x1xf32>
    %14 = arith.subf %10, %13 : vector<8x1xf32>
    %15 = math.exp %14 : vector<8x1xf32>
    %16 = vector.broadcast %13 : vector<8x1xf32> to vector<8x8xf32>
    %17 = arith.subf %9, %16 : vector<8x8xf32>
    %18 = math.exp %17 : vector<8x8xf32>
    %c0_12 = arith.constant 0 : index
    %c0_13 = arith.constant 0 : index
    %19 = vector.load %arg13[%c0_12, %c0_13] : memref<8x1xf32, #tpu.memory_space<vmem>>, vector<8x1xf32>
    %20 = arith.mulf %15, %19 : vector<8x1xf32>
    %cst_14 = arith.constant dense<0.000000e+00> : vector<8xf32>
    %21 = vector.multi_reduction <add>, %18, %cst_14 [1] : vector<8x8xf32> to vector<8xf32>
    %22 = vector.shape_cast %21 : vector<8xf32> to vector<8x1xf32>
    %23 = arith.addf %20, %22 : vector<8x1xf32>
    %c0_15 = arith.constant 0 : index
    %c0_16 = arith.constant 0 : index
    %24 = vector.load %arg13[%c0_15, %c0_16] : memref<8x1xf32, #tpu.memory_space<vmem>>, vector<8x1xf32>
    tpu.vector_store %arg13[%c0_15, %c0_16], %23 {strides = array<i32>} : memref<8x1xf32, #tpu.memory_space<vmem>>, vector<8x1xf32>,
    %c0_17 = arith.constant 0 : index
    %c0_18 = arith.constant 0 : index
    %25 = vector.load %arg14[%c0_17, %c0_18] : memref<8x128xf32, #tpu.memory_space<vmem>>, vector<8x128xf32>
    %26 = vector.broadcast %15 : vector<8x1xf32> to vector<8x128xf32>
    %27 = arith.mulf %26, %25 : vector<8x128xf32>
    %28 = arith.truncf %18 : vector<8x8xf32> to vector<8x8xbf16>
    %cst_19 = arith.constant dense<0.000000e+00> : vector<8x128xf32>
    %29 = tpu.matmul %28, %8, %cst_19 {dimension_numbers = #tpu.dot_dimension_numbers<[1], [0], [0], [1], [0, 0, 1, 1], [], []>} : vector<8x8xbf16>, vector<8x128xbf16>, vector<8x128xf32> -> vector<8x128xf32>
    %30 = arith.addf %27, %29 : vector<8x128xf32>
    %c0_20 = arith.constant 0 : index
    %c0_21 = arith.constant 0 : index
    %31 = vector.load %arg14[%c0_20, %c0_21] : memref<8x128xf32, #tpu.memory_space<vmem>>, vector<8x128xf32>
    tpu.vector_store %arg14[%c0_20, %c0_21], %30 {strides = array<i32>} : memref<8x128xf32, #tpu.memory_space<vmem>>, vector<8x128xf32>,
    %c0_22 = arith.constant 0 : index
    %c0_23 = arith.constant 0 : index
    %32 = vector.load %arg12[%c0_22, %c0_23] : memref<8x1xf32, #tpu.memory_space<vmem>>, vector<8x1xf32>
    tpu.vector_store %arg12[%c0_22, %c0_23], %13 {strides = array<i32>} : memref<8x1xf32, #tpu.memory_space<vmem>>, vector<8x1xf32>,
    %c0_i32_24 = arith.constant 0 : i32
    %33 = arith.cmpi eq, %arg2, %c0_i32_24 : i32
    %34 = arith.extui %33 : i1 to i32
    %c0_i32_25 = arith.constant 0 : i32
    %35 = arith.cmpi ne, %34, %c0_i32_25 : i32
    scf.if %35 {
      %c0_26 = arith.constant 0 : index
      %c0_27 = arith.constant 0 : index
      %36 = vector.load %arg14[%c0_26, %c0_27] : memref<8x128xf32, #tpu.memory_space<vmem>>, vector<8x128xf32>
      %c0_28 = arith.constant 0 : index
      %c0_29 = arith.constant 0 : index
      %37 = vector.load %arg13[%c0_28, %c0_29] : memref<8x1xf32, #tpu.memory_space<vmem>>, vector<8x1xf32>
      %38 = tpu.reciprocal %37 {approx = true} : vector<8x1xf32> -> vector<8x1xf32>
      %39 = vector.broadcast %38 : vector<8x1xf32> to vector<8x128xf32>
      %40 = arith.mulf %36, %39 : vector<8x128xf32>
      %41 = arith.truncf %40 : vector<8x128xf32> to vector<8x128xbf16>
      %c0_30 = arith.constant 0 : index
      %c0_31 = arith.constant 0 : index
      %42 = vector.load %arg7[%c0_30, %c0_31] : memref<128x128xbf16, #tpu.memory_space<vmem>>, vector<128x128xbf16>
      %cst_32 = arith.constant dense<0.000000e+00> : vector<8x128xf32>
      %43 = tpu.matmul %41, %42, %cst_32 {dimension_numbers = #tpu.dot_dimension_numbers<[1], [0], [0], [1], [0, 0, 1, 1], [], []>} : vector<8x128xbf16>, vector<128x128xbf16>, vector<8x128xf32> -> vector<8x128xf32>
      %c0_33 = arith.constant 0 : index
      %c0_34 = arith.constant 0 : index
      %44 = vector.load %arg8[%c0_33, %c0_34] : memref<1x128xf32, #tpu.memory_space<vmem>>, vector<1x128xf32>
      %45 = vector.broadcast %44 : vector<1x128xf32> to vector<8x128xf32>
      %46 = arith.addf %43, %45 : vector<8x128xf32>
      %c0_35 = arith.constant 0 : index
      %c0_36 = arith.constant 0 : index
      %c0_37 = arith.constant 0 : index
      %47 = vector.load %arg3[%c0_35, %c0_36, %c0_37] : memref<1x8x128xf32, #tpu.memory_space<vmem>>, vector<1x8x128xf32>
      %48 = vector.shape_cast %47 : vector<1x8x128xf32> to vector<8x128xf32>
      %49 = arith.addf %48, %46 : vector<8x128xf32>
      %c0_38 = arith.constant 0 : index
      %c0_39 = arith.constant 0 : index
      %c0_40 = arith.constant 0 : index
      %50 = vector.load %arg9[%c0_38, %c0_39, %c0_40] : memref<1x8x128xf32, #tpu.memory_space<vmem>>, vector<1x8x128xf32>
      %51 = vector.shape_cast %50 : vector<1x8x128xf32> to vector<8x128xf32>
      %52 = vector.shape_cast %49 : vector<8x128xf32> to vector<1x8x128xf32>
      tpu.vector_store %arg9[%c0_38, %c0_39, %c0_40], %52 {strides = array<i32>} : memref<1x8x128xf32, #tpu.memory_space<vmem>>, vector<1x8x128xf32>,
      %cst_41 = arith.constant dense<0.000000e+00> : vector<128xf32>
      %53 = vector.multi_reduction <add>, %49, %cst_41 [0] : vector<8x128xf32> to vector<128xf32>
      %54 = vector.shape_cast %53 : vector<128xf32> to vector<1x128xf32>
      %55 = arith.mulf %49, %49 : vector<8x128xf32>
      %cst_42 = arith.constant dense<0.000000e+00> : vector<128xf32>
      %56 = vector.multi_reduction <add>, %55, %cst_42 [0] : vector<8x128xf32> to vector<128xf32>
      %57 = vector.shape_cast %56 : vector<128xf32> to vector<1x128xf32>
      %58 = vector.shape_cast %54 : vector<1x128xf32> to vector<1x128xf32>
      %59 = vector.broadcast %58 : vector<1x128xf32> to vector<8x128xf32>
      %c0_43 = arith.constant 0 : index
      %c0_44 = arith.constant 0 : index
      %c0_45 = arith.constant 0 : index
      %c0_46 = arith.constant 0 : index
      %60 = vector.load %arg10[%c0_43, %c0_44, %c0_45, %c0_46] : memref<1x1x8x128xf32, #tpu.memory_space<vmem>>, vector<1x1x8x128xf32>
      %61 = vector.shape_cast %60 : vector<1x1x8x128xf32> to vector<8x128xf32>
      %62 = vector.shape_cast %59 : vector<8x128xf32> to vector<1x1x8x128xf32>
      tpu.vector_store %arg10[%c0_43, %c0_44, %c0_45, %c0_46], %62 {strides = array<i32>} : memref<1x1x8x128xf32, #tpu.memory_space<vmem>>, vector<1x1x8x128xf32>,
      %63 = vector.shape_cast %57 : vector<1x128xf32> to vector<1x128xf32>
      %64 = vector.broadcast %63 : vector<1x128xf32> to vector<8x128xf32>
      %c0_47 = arith.constant 0 : index
      %c0_48 = arith.constant 0 : index
      %c0_49 = arith.constant 0 : index
      %c0_50 = arith.constant 0 : index
      %65 = vector.load %arg11[%c0_47, %c0_48, %c0_49, %c0_50] : memref<1x1x8x128xf32, #tpu.memory_space<vmem>>, vector<1x1x8x128xf32>
      %66 = vector.shape_cast %65 : vector<1x1x8x128xf32> to vector<8x128xf32>
      %67 = vector.shape_cast %64 : vector<8x128xf32> to vector<1x1x8x128xf32>
      tpu.vector_store %arg11[%c0_47, %c0_48, %c0_49, %c0_50], %67 {strides = array<i32>} : memref<1x1x8x128xf32, #tpu.memory_space<vmem>>, vector<1x1x8x128xf32>,
    } else {
    }
    return
  }
  func.func @transform_0(%arg0: i32, %arg1: i32, %arg2: i32) -> (i32, i32, i32) {
    %c0_i32 = arith.constant 0 : i32
    %c0_i32_0 = arith.constant 0 : i32
    return %arg0, %arg1, %c0_i32 : i32, i32, i32
  }
  func.func @transform_1(%arg0: i32, %arg1: i32, %arg2: i32) -> (i32, i32, i32) {
    %c0_i32 = arith.constant 0 : i32
    %c0_i32_0 = arith.constant 0 : i32
    return %arg0, %arg1, %c0_i32 : i32, i32, i32
  }
  func.func @transform_2(%arg0: i32, %arg1: i32, %arg2: i32) -> (i32, i32, i32) {
    %c0_i32 = arith.constant 0 : i32
    %c0_i32_0 = arith.constant 0 : i32
    return %arg0, %arg2, %c0_i32 : i32, i32, i32
  }
  func.func @transform_3(%arg0: i32, %arg1: i32, %arg2: i32) -> (i32, i32, i32) {
    %c0_i32 = arith.constant 0 : i32
    %c0_i32_0 = arith.constant 0 : i32
    return %arg0, %arg2, %c0_i32 : i32, i32, i32
  }
  func.func @transform_4(%arg0: i32, %arg1: i32, %arg2: i32) -> (i32, i32) {
    %c0_i32 = arith.constant 0 : i32
    %c0_i32_0 = arith.constant 0 : i32
    %c0_i32_1 = arith.constant 0 : i32
    return %c0_i32, %c0_i32_0 : i32, i32
  }
  func.func @transform_5(%arg0: i32, %arg1: i32, %arg2: i32) -> (i32, i32) {
    %c0_i32 = arith.constant 0 : i32
    %c0_i32_0 = arith.constant 0 : i32
    %c0_i32_1 = arith.constant 0 : i32
    return %c0_i32, %c0_i32_0 : i32, i32
  }
  func.func @transform_6(%arg0: i32, %arg1: i32, %arg2: i32) -> (i32, i32, i32) {
    %c0_i32 = arith.constant 0 : i32
    %c0_i32_0 = arith.constant 0 : i32
    return %arg0, %arg1, %c0_i32 : i32, i32, i32
  }
  func.func @transform_7(%arg0: i32, %arg1: i32, %arg2: i32) -> (i32, i32, i32, i32) {
    %c0_i32 = arith.constant 0 : i32
    %c0_i32_0 = arith.constant 0 : i32
    %c0_i32_1 = arith.constant 0 : i32
    return %arg0, %arg1, %c0_i32, %c0_i32_0 : i32, i32, i32, i32
  }
  func.func @transform_8(%arg0: i32, %arg1: i32, %arg2: i32) -> (i32, i32, i32, i32) {
    %c0_i32 = arith.constant 0 : i32
    %c0_i32_0 = arith.constant 0 : i32
    %c0_i32_1 = arith.constant 0 : i32
    return %arg0, %arg1, %c0_i32, %c0_i32_0 : i32, i32, i32, i32
  }
}

module attributes {stable_mosaic.version = 11 : i64} {
  func.func @_proj_q_kernel(%arg0: i32, %arg1: i32, %arg2: memref<1x8x128xf32, #tpu.memory_space<vmem>>, %arg3: memref<1x128xf32, #tpu.memory_space<vmem>>, %arg4: memref<1x128xf32, #tpu.memory_space<vmem>>, %arg5: memref<128x128xbf16, #tpu.memory_space<vmem>>, %arg6: memref<1x128xf32, #tpu.memory_space<vmem>>, %arg7: memref<1x8x128xbf16, #tpu.memory_space<vmem>>) attributes {dimension_semantics = [#tpu.dimension_semantics<parallel>, #tpu.dimension_semantics<parallel>], iteration_bounds = array<i64: 2, 1>, scalar_prefetch = 0 : i64, scratch_operands = 0 : i64, tpu.core_type = #tpu.core_type<tc>, window_params = [{transform_indices = @transform_0, window_bounds = array<i64: 1, 8, 128>}, {pipeline_mode = #tpu.pipeline_mode<synchronous>, transform_indices = @transform_1, window_bounds = array<i64: 1, 128>}, {pipeline_mode = #tpu.pipeline_mode<synchronous>, transform_indices = @transform_2, window_bounds = array<i64: 1, 128>}, {pipeline_mode = #tpu.pipeline_mode<synchronous>, transform_indices = @transform_3, window_bounds = array<i64: 128, 128>}, {pipeline_mode = #tpu.pipeline_mode<synchronous>, transform_indices = @transform_4, window_bounds = array<i64: 1, 128>}, {transform_indices = @transform_5, window_bounds = array<i64: 1, 8, 128>}]} {
    %c0 = arith.constant 0 : index
    %c0_0 = arith.constant 0 : index
    %c0_1 = arith.constant 0 : index
    %0 = vector.load %arg2[%c0, %c0_0, %c0_1] : memref<1x8x128xf32, #tpu.memory_space<vmem>>, vector<1x8x128xf32>
    %1 = vector.shape_cast %0 : vector<1x8x128xf32> to vector<8x128xf32>
    %c0_2 = arith.constant 0 : index
    %c0_3 = arith.constant 0 : index
    %2 = vector.load %arg3[%c0_2, %c0_3] : memref<1x128xf32, #tpu.memory_space<vmem>>, vector<1x128xf32>
    %3 = vector.broadcast %2 : vector<1x128xf32> to vector<8x128xf32>
    %4 = arith.mulf %1, %3 : vector<8x128xf32>
    %c0_4 = arith.constant 0 : index
    %c0_5 = arith.constant 0 : index
    %5 = vector.load %arg4[%c0_4, %c0_5] : memref<1x128xf32, #tpu.memory_space<vmem>>, vector<1x128xf32>
    %6 = vector.broadcast %5 : vector<1x128xf32> to vector<8x128xf32>
    %7 = arith.addf %4, %6 : vector<8x128xf32>
    %8 = arith.truncf %7 : vector<8x128xf32> to vector<8x128xbf16>
    %c0_6 = arith.constant 0 : index
    %c0_7 = arith.constant 0 : index
    %9 = vector.load %arg5[%c0_6, %c0_7] : memref<128x128xbf16, #tpu.memory_space<vmem>>, vector<128x128xbf16>
    %cst = arith.constant dense<0.000000e+00> : vector<8x128xf32>
    %10 = tpu.matmul %8, %9, %cst {dimension_numbers = #tpu.dot_dimension_numbers<[1], [0], [0], [1], [0, 0, 1, 1], [], []>} : vector<8x128xbf16>, vector<128x128xbf16>, vector<8x128xf32> -> vector<8x128xf32>
    %c0_8 = arith.constant 0 : index
    %c0_9 = arith.constant 0 : index
    %11 = vector.load %arg6[%c0_8, %c0_9] : memref<1x128xf32, #tpu.memory_space<vmem>>, vector<1x128xf32>
    %12 = vector.broadcast %11 : vector<1x128xf32> to vector<8x128xf32>
    %13 = arith.addf %10, %12 : vector<8x128xf32>
    %cst_10 = arith.constant 0.176776692 : f32
    %14 = vector.broadcast %cst_10 : f32 to vector<8x128xf32>
    %15 = arith.mulf %13, %14 : vector<8x128xf32>
    %16 = arith.truncf %15 : vector<8x128xf32> to vector<8x128xbf16>
    %c0_11 = arith.constant 0 : index
    %c0_12 = arith.constant 0 : index
    %c0_13 = arith.constant 0 : index
    %17 = vector.load %arg7[%c0_11, %c0_12, %c0_13] : memref<1x8x128xbf16, #tpu.memory_space<vmem>>, vector<1x8x128xbf16>
    %18 = vector.shape_cast %17 : vector<1x8x128xbf16> to vector<8x128xbf16>
    %19 = vector.shape_cast %16 : vector<8x128xbf16> to vector<1x8x128xbf16>
    tpu.vector_store %arg7[%c0_11, %c0_12, %c0_13], %19 {strides = array<i32>} : memref<1x8x128xbf16, #tpu.memory_space<vmem>>, vector<1x8x128xbf16>,
    return
  }
  func.func @transform_0(%arg0: i32, %arg1: i32) -> (i32, i32, i32) {
    %c0_i32 = arith.constant 0 : i32
    %c0_i32_0 = arith.constant 0 : i32
    return %arg0, %arg1, %c0_i32 : i32, i32, i32
  }
  func.func @transform_1(%arg0: i32, %arg1: i32) -> (i32, i32) {
    %c0_i32 = arith.constant 0 : i32
    %c0_i32_0 = arith.constant 0 : i32
    %c0_i32_1 = arith.constant 0 : i32
    return %c0_i32, %c0_i32_0 : i32, i32
  }
  func.func @transform_2(%arg0: i32, %arg1: i32) -> (i32, i32) {
    %c0_i32 = arith.constant 0 : i32
    %c0_i32_0 = arith.constant 0 : i32
    %c0_i32_1 = arith.constant 0 : i32
    return %c0_i32, %c0_i32_0 : i32, i32
  }
  func.func @transform_3(%arg0: i32, %arg1: i32) -> (i32, i32) {
    %c0_i32 = arith.constant 0 : i32
    %c0_i32_0 = arith.constant 0 : i32
    %c0_i32_1 = arith.constant 0 : i32
    return %c0_i32, %c0_i32_0 : i32, i32
  }
  func.func @transform_4(%arg0: i32, %arg1: i32) -> (i32, i32) {
    %c0_i32 = arith.constant 0 : i32
    %c0_i32_0 = arith.constant 0 : i32
    %c0_i32_1 = arith.constant 0 : i32
    return %c0_i32, %c0_i32_0 : i32, i32
  }
  func.func @transform_5(%arg0: i32, %arg1: i32) -> (i32, i32, i32) {
    %c0_i32 = arith.constant 0 : i32
    %c0_i32_0 = arith.constant 0 : i32
    return %arg0, %arg1, %c0_i32 : i32, i32, i32
  }
}

module attributes {stable_mosaic.version = 11 : i64} {
  func.func @_proj_kv_kernel(%arg0: i32, %arg1: i32, %arg2: memref<1x8x128xbf16, #tpu.memory_space<vmem>>, %arg3: memref<128x128xbf16, #tpu.memory_space<vmem>>, %arg4: memref<1x128xf32, #tpu.memory_space<vmem>>, %arg5: memref<128x128xbf16, #tpu.memory_space<vmem>>, %arg6: memref<1x128xf32, #tpu.memory_space<vmem>>, %arg7: memref<1x8x128xbf16, #tpu.memory_space<vmem>>, %arg8: memref<1x8x128xbf16, #tpu.memory_space<vmem>>) attributes {dimension_semantics = [#tpu.dimension_semantics<parallel>, #tpu.dimension_semantics<parallel>], iteration_bounds = array<i64: 2, 1>, scalar_prefetch = 0 : i64, scratch_operands = 0 : i64, tpu.core_type = #tpu.core_type<tc>, window_params = [{transform_indices = @transform_0, window_bounds = array<i64: 1, 8, 128>}, {pipeline_mode = #tpu.pipeline_mode<synchronous>, transform_indices = @transform_1, window_bounds = array<i64: 128, 128>}, {pipeline_mode = #tpu.pipeline_mode<synchronous>, transform_indices = @transform_2, window_bounds = array<i64: 1, 128>}, {pipeline_mode = #tpu.pipeline_mode<synchronous>, transform_indices = @transform_3, window_bounds = array<i64: 128, 128>}, {pipeline_mode = #tpu.pipeline_mode<synchronous>, transform_indices = @transform_4, window_bounds = array<i64: 1, 128>}, {transform_indices = @transform_5, window_bounds = array<i64: 1, 8, 128>}, {transform_indices = @transform_6, window_bounds = array<i64: 1, 8, 128>}]} {
    %c0 = arith.constant 0 : index
    %c0_0 = arith.constant 0 : index
    %c0_1 = arith.constant 0 : index
    %0 = vector.load %arg2[%c0, %c0_0, %c0_1] : memref<1x8x128xbf16, #tpu.memory_space<vmem>>, vector<1x8x128xbf16>
    %1 = vector.shape_cast %0 : vector<1x8x128xbf16> to vector<8x128xbf16>
    %c0_2 = arith.constant 0 : index
    %c0_3 = arith.constant 0 : index
    %2 = vector.load %arg3[%c0_2, %c0_3] : memref<128x128xbf16, #tpu.memory_space<vmem>>, vector<128x128xbf16>
    %cst = arith.constant dense<0.000000e+00> : vector<8x128xf32>
    %3 = tpu.matmul %1, %2, %cst {dimension_numbers = #tpu.dot_dimension_numbers<[1], [0], [0], [1], [0, 0, 1, 1], [], []>} : vector<8x128xbf16>, vector<128x128xbf16>, vector<8x128xf32> -> vector<8x128xf32>
    %c0_4 = arith.constant 0 : index
    %c0_5 = arith.constant 0 : index
    %4 = vector.load %arg4[%c0_4, %c0_5] : memref<1x128xf32, #tpu.memory_space<vmem>>, vector<1x128xf32>
    %5 = vector.broadcast %4 : vector<1x128xf32> to vector<8x128xf32>
    %6 = arith.addf %3, %5 : vector<8x128xf32>
    %7 = arith.truncf %6 : vector<8x128xf32> to vector<8x128xbf16>
    %c0_6 = arith.constant 0 : index
    %c0_7 = arith.constant 0 : index
    %c0_8 = arith.constant 0 : index
    %8 = vector.load %arg7[%c0_6, %c0_7, %c0_8] : memref<1x8x128xbf16, #tpu.memory_space<vmem>>, vector<1x8x128xbf16>
    %9 = vector.shape_cast %8 : vector<1x8x128xbf16> to vector<8x128xbf16>
    %10 = vector.shape_cast %7 : vector<8x128xbf16> to vector<1x8x128xbf16>
    tpu.vector_store %arg7[%c0_6, %c0_7, %c0_8], %10 {strides = array<i32>} : memref<1x8x128xbf16, #tpu.memory_space<vmem>>, vector<1x8x128xbf16>,
    %c0_9 = arith.constant 0 : index
    %c0_10 = arith.constant 0 : index
    %11 = vector.load %arg5[%c0_9, %c0_10] : memref<128x128xbf16, #tpu.memory_space<vmem>>, vector<128x128xbf16>
    %cst_11 = arith.constant dense<0.000000e+00> : vector<8x128xf32>
    %12 = tpu.matmul %1, %11, %cst_11 {dimension_numbers = #tpu.dot_dimension_numbers<[1], [0], [0], [1], [0, 0, 1, 1], [], []>} : vector<8x128xbf16>, vector<128x128xbf16>, vector<8x128xf32> -> vector<8x128xf32>
    %c0_12 = arith.constant 0 : index
    %c0_13 = arith.constant 0 : index
    %13 = vector.load %arg6[%c0_12, %c0_13] : memref<1x128xf32, #tpu.memory_space<vmem>>, vector<1x128xf32>
    %14 = vector.broadcast %13 : vector<1x128xf32> to vector<8x128xf32>
    %15 = arith.addf %12, %14 : vector<8x128xf32>
    %16 = arith.truncf %15 : vector<8x128xf32> to vector<8x128xbf16>
    %c0_14 = arith.constant 0 : index
    %c0_15 = arith.constant 0 : index
    %c0_16 = arith.constant 0 : index
    %17 = vector.load %arg8[%c0_14, %c0_15, %c0_16] : memref<1x8x128xbf16, #tpu.memory_space<vmem>>, vector<1x8x128xbf16>
    %18 = vector.shape_cast %17 : vector<1x8x128xbf16> to vector<8x128xbf16>
    %19 = vector.shape_cast %16 : vector<8x128xbf16> to vector<1x8x128xbf16>
    tpu.vector_store %arg8[%c0_14, %c0_15, %c0_16], %19 {strides = array<i32>} : memref<1x8x128xbf16, #tpu.memory_space<vmem>>, vector<1x8x128xbf16>,
    return
  }
  func.func @transform_0(%arg0: i32, %arg1: i32) -> (i32, i32, i32) {
    %c0_i32 = arith.constant 0 : i32
    %c0_i32_0 = arith.constant 0 : i32
    return %arg0, %arg1, %c0_i32 : i32, i32, i32
  }
  func.func @transform_1(%arg0: i32, %arg1: i32) -> (i32, i32) {
    %c0_i32 = arith.constant 0 : i32
    %c0_i32_0 = arith.constant 0 : i32
    %c0_i32_1 = arith.constant 0 : i32
    return %c0_i32, %c0_i32_0 : i32, i32
  }
  func.func @transform_2(%arg0: i32, %arg1: i32) -> (i32, i32) {
    %c0_i32 = arith.constant 0 : i32
    %c0_i32_0 = arith.constant 0 : i32
    %c0_i32_1 = arith.constant 0 : i32
    return %c0_i32, %c0_i32_0 : i32, i32
  }
  func.func @transform_3(%arg0: i32, %arg1: i32) -> (i32, i32) {
    %c0_i32 = arith.constant 0 : i32
    %c0_i32_0 = arith.constant 0 : i32
    %c0_i32_1 = arith.constant 0 : i32
    return %c0_i32, %c0_i32_0 : i32, i32
  }
  func.func @transform_4(%arg0: i32, %arg1: i32) -> (i32, i32) {
    %c0_i32 = arith.constant 0 : i32
    %c0_i32_0 = arith.constant 0 : i32
    %c0_i32_1 = arith.constant 0 : i32
    return %c0_i32, %c0_i32_0 : i32, i32
  }
  func.func @transform_5(%arg0: i32, %arg1: i32) -> (i32, i32, i32) {
    %c0_i32 = arith.constant 0 : i32
    %c0_i32_0 = arith.constant 0 : i32
    return %arg0, %arg1, %c0_i32 : i32, i32, i32
  }
  func.func @transform_6(%arg0: i32, %arg1: i32) -> (i32, i32, i32) {
    %c0_i32 = arith.constant 0 : i32
    %c0_i32_0 = arith.constant 0 : i32
    return %arg0, %arg1, %c0_i32 : i32, i32, i32
  }
}

module attributes {stable_mosaic.version = 11 : i64} {
  func.func @_ffn_kernel(%arg0: i32, %arg1: i32, %arg2: memref<16x128xf32, #tpu.memory_space<vmem>>, %arg3: memref<1x128xf32, #tpu.memory_space<vmem>>, %arg4: memref<1x128xf32, #tpu.memory_space<vmem>>, %arg5: memref<128x128xbf16, #tpu.memory_space<vmem>>, %arg6: memref<1x128xf32, #tpu.memory_space<vmem>>, %arg7: memref<128x128xbf16, #tpu.memory_space<vmem>>, %arg8: memref<1x128xf32, #tpu.memory_space<vmem>>, %arg9: memref<16x128xf32, #tpu.memory_space<vmem>>, %arg10: memref<16x128xbf16, #tpu.memory_space<vmem>>, %arg11: memref<16x128xf32, #tpu.memory_space<vmem>>) attributes {dimension_semantics = [#tpu.dimension_semantics<parallel>, #tpu.dimension_semantics<arbitrary>], iteration_bounds = array<i64: 1, 1>, scalar_prefetch = 0 : i64, scratch_operands = 2 : i64, tpu.core_type = #tpu.core_type<tc>, window_params = [{transform_indices = @transform_0, window_bounds = array<i64: 16, 128>}, {pipeline_mode = #tpu.pipeline_mode<synchronous>, transform_indices = @transform_1, window_bounds = array<i64: 1, 128>}, {pipeline_mode = #tpu.pipeline_mode<synchronous>, transform_indices = @transform_2, window_bounds = array<i64: 1, 128>}, {transform_indices = @transform_3, window_bounds = array<i64: 128, 128>}, {transform_indices = @transform_4, window_bounds = array<i64: 1, 128>}, {transform_indices = @transform_5, window_bounds = array<i64: 128, 128>}, {pipeline_mode = #tpu.pipeline_mode<synchronous>, transform_indices = @transform_6, window_bounds = array<i64: 1, 128>}, {transform_indices = @transform_7, window_bounds = array<i64: 16, 128>}]} {
    %c0_i32 = arith.constant 0 : i32
    %0 = arith.cmpi eq, %arg1, %c0_i32 : i32
    %1 = arith.extui %0 : i1 to i32
    %c0_i32_0 = arith.constant 0 : i32
    %2 = arith.cmpi ne, %1, %c0_i32_0 : i32
    scf.if %2 {
      %c0_16 = arith.constant 0 : index
      %c0_17 = arith.constant 0 : index
      %20 = vector.load %arg2[%c0_16, %c0_17] : memref<16x128xf32, #tpu.memory_space<vmem>>, vector<16x128xf32>
      %c0_18 = arith.constant 0 : index
      %c0_19 = arith.constant 0 : index
      %21 = vector.load %arg3[%c0_18, %c0_19] : memref<1x128xf32, #tpu.memory_space<vmem>>, vector<1x128xf32>
      %22 = vector.broadcast %21 : vector<1x128xf32> to vector<16x128xf32>
      %23 = arith.mulf %20, %22 : vector<16x128xf32>
      %c0_20 = arith.constant 0 : index
      %c0_21 = arith.constant 0 : index
      %24 = vector.load %arg4[%c0_20, %c0_21] : memref<1x128xf32, #tpu.memory_space<vmem>>, vector<1x128xf32>
      %25 = vector.broadcast %24 : vector<1x128xf32> to vector<16x128xf32>
      %26 = arith.addf %23, %25 : vector<16x128xf32>
      %27 = arith.truncf %26 : vector<16x128xf32> to vector<16x128xbf16>
      %c0_22 = arith.constant 0 : index
      %c0_23 = arith.constant 0 : index
      %28 = vector.load %arg10[%c0_22, %c0_23] : memref<16x128xbf16, #tpu.memory_space<vmem>>, vector<16x128xbf16>
      tpu.vector_store %arg10[%c0_22, %c0_23], %27 {strides = array<i32>} : memref<16x128xbf16, #tpu.memory_space<vmem>>, vector<16x128xbf16>,
      %cst_24 = arith.constant 0.000000e+00 : f32
      %29 = vector.broadcast %cst_24 : f32 to vector<16x128xf32>
      %c0_25 = arith.constant 0 : index
      %c0_26 = arith.constant 0 : index
      %30 = vector.load %arg11[%c0_25, %c0_26] : memref<16x128xf32, #tpu.memory_space<vmem>>, vector<16x128xf32>
      tpu.vector_store %arg11[%c0_25, %c0_26], %29 {strides = array<i32>} : memref<16x128xf32, #tpu.memory_space<vmem>>, vector<16x128xf32>,
    } else {
    }
    %c0 = arith.constant 0 : index
    %c0_1 = arith.constant 0 : index
    %3 = vector.load %arg10[%c0, %c0_1] : memref<16x128xbf16, #tpu.memory_space<vmem>>, vector<16x128xbf16>
    %c0_2 = arith.constant 0 : index
    %c0_3 = arith.constant 0 : index
    %4 = vector.load %arg5[%c0_2, %c0_3] : memref<128x128xbf16, #tpu.memory_space<vmem>>, vector<128x128xbf16>
    %cst = arith.constant dense<0.000000e+00> : vector<16x128xf32>
    %5 = tpu.matmul %3, %4, %cst {dimension_numbers = #tpu.dot_dimension_numbers<[1], [0], [0], [1], [0, 0, 1, 1], [], []>} : vector<16x128xbf16>, vector<128x128xbf16>, vector<16x128xf32> -> vector<16x128xf32>
    %c0_4 = arith.constant 0 : index
    %c0_5 = arith.constant 0 : index
    %6 = vector.load %arg6[%c0_4, %c0_5] : memref<1x128xf32, #tpu.memory_space<vmem>>, vector<1x128xf32>
    %7 = vector.broadcast %6 : vector<1x128xf32> to vector<16x128xf32>
    %8 = arith.addf %5, %7 : vector<16x128xf32>
    %cst_6 = arith.constant 0.000000e+00 : f32
    %9 = vector.broadcast %cst_6 : f32 to vector<16x128xf32>
    %10 = arith.maximumf %8, %9 : vector<16x128xf32>
    %11 = arith.truncf %10 : vector<16x128xf32> to vector<16x128xbf16>
    %c0_7 = arith.constant 0 : index
    %c0_8 = arith.constant 0 : index
    %12 = vector.load %arg11[%c0_7, %c0_8] : memref<16x128xf32, #tpu.memory_space<vmem>>, vector<16x128xf32>
    %c0_9 = arith.constant 0 : index
    %c0_10 = arith.constant 0 : index
    %13 = vector.load %arg7[%c0_9, %c0_10] : memref<128x128xbf16, #tpu.memory_space<vmem>>, vector<128x128xbf16>
    %cst_11 = arith.constant dense<0.000000e+00> : vector<16x128xf32>
    %14 = tpu.matmul %11, %13, %cst_11 {dimension_numbers = #tpu.dot_dimension_numbers<[1], [0], [0], [1], [0, 0, 1, 1], [], []>} : vector<16x128xbf16>, vector<128x128xbf16>, vector<16x128xf32> -> vector<16x128xf32>
    %15 = arith.addf %12, %14 : vector<16x128xf32>
    %c0_12 = arith.constant 0 : index
    %c0_13 = arith.constant 0 : index
    %16 = vector.load %arg11[%c0_12, %c0_13] : memref<16x128xf32, #tpu.memory_space<vmem>>, vector<16x128xf32>
    tpu.vector_store %arg11[%c0_12, %c0_13], %15 {strides = array<i32>} : memref<16x128xf32, #tpu.memory_space<vmem>>, vector<16x128xf32>,
    %c0_i32_14 = arith.constant 0 : i32
    %17 = arith.cmpi eq, %arg1, %c0_i32_14 : i32
    %18 = arith.extui %17 : i1 to i32
    %c0_i32_15 = arith.constant 0 : i32
    %19 = arith.cmpi ne, %18, %c0_i32_15 : i32
    scf.if %19 {
      %c0_16 = arith.constant 0 : index
      %c0_17 = arith.constant 0 : index
      %20 = vector.load %arg2[%c0_16, %c0_17] : memref<16x128xf32, #tpu.memory_space<vmem>>, vector<16x128xf32>
      %c0_18 = arith.constant 0 : index
      %c0_19 = arith.constant 0 : index
      %21 = vector.load %arg11[%c0_18, %c0_19] : memref<16x128xf32, #tpu.memory_space<vmem>>, vector<16x128xf32>
      %22 = arith.addf %20, %21 : vector<16x128xf32>
      %c0_20 = arith.constant 0 : index
      %c0_21 = arith.constant 0 : index
      %23 = vector.load %arg8[%c0_20, %c0_21] : memref<1x128xf32, #tpu.memory_space<vmem>>, vector<1x128xf32>
      %24 = vector.broadcast %23 : vector<1x128xf32> to vector<16x128xf32>
      %25 = arith.addf %22, %24 : vector<16x128xf32>
      %c0_22 = arith.constant 0 : index
      %c0_23 = arith.constant 0 : index
      %26 = vector.load %arg9[%c0_22, %c0_23] : memref<16x128xf32, #tpu.memory_space<vmem>>, vector<16x128xf32>
      tpu.vector_store %arg9[%c0_22, %c0_23], %25 {strides = array<i32>} : memref<16x128xf32, #tpu.memory_space<vmem>>, vector<16x128xf32>,
    } else {
    }
    return
  }
  func.func @transform_0(%arg0: i32, %arg1: i32) -> (i32, i32) {
    %c0_i32 = arith.constant 0 : i32
    %c0_i32_0 = arith.constant 0 : i32
    return %arg0, %c0_i32 : i32, i32
  }
  func.func @transform_1(%arg0: i32, %arg1: i32) -> (i32, i32) {
    %c0_i32 = arith.constant 0 : i32
    %c0_i32_0 = arith.constant 0 : i32
    %c0_i32_1 = arith.constant 0 : i32
    return %c0_i32, %c0_i32_0 : i32, i32
  }
  func.func @transform_2(%arg0: i32, %arg1: i32) -> (i32, i32) {
    %c0_i32 = arith.constant 0 : i32
    %c0_i32_0 = arith.constant 0 : i32
    %c0_i32_1 = arith.constant 0 : i32
    return %c0_i32, %c0_i32_0 : i32, i32
  }
  func.func @transform_3(%arg0: i32, %arg1: i32) -> (i32, i32) {
    %c0_i32 = arith.constant 0 : i32
    %c0_i32_0 = arith.constant 0 : i32
    return %c0_i32, %arg1 : i32, i32
  }
  func.func @transform_4(%arg0: i32, %arg1: i32) -> (i32, i32) {
    %c0_i32 = arith.constant 0 : i32
    %c0_i32_0 = arith.constant 0 : i32
    return %c0_i32, %arg1 : i32, i32
  }
  func.func @transform_5(%arg0: i32, %arg1: i32) -> (i32, i32) {
    %c0_i32 = arith.constant 0 : i32
    %c0_i32_0 = arith.constant 0 : i32
    return %arg1, %c0_i32 : i32, i32
  }
  func.func @transform_6(%arg0: i32, %arg1: i32) -> (i32, i32) {
    %c0_i32 = arith.constant 0 : i32
    %c0_i32_0 = arith.constant 0 : i32
    %c0_i32_1 = arith.constant 0 : i32
    return %c0_i32, %c0_i32_0 : i32, i32
  }
  func.func @transform_7(%arg0: i32, %arg1: i32) -> (i32, i32) {
    %c0_i32 = arith.constant 0 : i32
    %c0_i32_0 = arith.constant 0 : i32
    return %arg0, %c0_i32 : i32, i32
  }
}

</mosaic_0001>

<bundles_post_ra>
// kernel: decoder_layer.8
= control target key start
LH: loop header
LB: loop body
LE: loop exit
PB: predicated region body
PF: predicated region fallthrough
CT: control target
= control target key end

     0   :  { %s597_s18 = smov 0   ;;  %s599_s19 = smov 0   ;;  %s667_s0 = inlined_call_operand.vmem [shape: f32[2,8,128], index: 0, kind: input, shape index: {}]   ;;  %s668_s1 = inlined_call_operand.vmem [shape: f32[1,128], index: 1, kind: input, shape index: {}]   ;;  %s669_s2 = inlined_call_operand.vmem [shape: f32[1,128], index: 2, kind: input, shape index: {}]   ;;  %s670_s3 = inlined_call_operand.vmem [shape: bf16[128,128], index: 3, kind: input, shape index: {}]   ;;  %s671_s4 = inlined_call_operand.vmem [shape: f32[1,128], index: 4, kind: input, shape index: {}]   ;;  %s672_s5 = inlined_call_operand.vmem [shape: bf16[2,8,128], index: 5, kind: output, shape index: {}]  }
   0x1   :  { %s601_s20 = smov 0  }
   0x2 LB: > { %s27_s21 = sadd.s32 1, %s559_s19  ;;  %p462_p0 = scmp.ge.s32.totalorder %s563_s20, 1  ;;  %s563_s20 = sphi %s601_s20, %s15_s20   ;;  %s559_s19 = sphi %s599_s19, %s674_s19   ;;  %s555_s18 = sphi %s597_s18, %s673_s18  }
   0x3   : > { %p29_p1 = scmp.ge.s32.totalorder %s27_s21, 2  ;;  %p205_p2 = scmp.lt.s32.totalorder %s563_s20, 3 }
   0x5   : > { %s676_s21 = smov (%p29_p1, %s27_s21), 0  ;;  %p206_p3 = pnand %p462_p0, %p205_p2 }
   0x6   : > { %v533_v0 = vld [vmem:[%s670_s3] sm:$0xff] (!%p206_p3)   ;;  %v565_v1 = vmov (!%p206_p3), 0.0   ;;  %v534_v2 = vld [vmem:[%s670_s3 + $0x8] sm:$0xff] (!%p206_p3)   ;;  %vm566_vm0 = vmmov (!%p206_p3), 0   ;;  %p237_p4 = scmp.lt.s32.totalorder (!%p206_p3), %s555_s18, 1  ;;  %v535_v3 = vld [vmem:[%s670_s3 + $0x10] sm:$0xff] (!%p206_p3)  }
   0x7   : > { %209 = sbr.rel (%p206_p3) target bundleno = 258 (0x102), region = 40  ;;  %487 = vmatprep.subr.bf16.mxu0 (!%p206_p3), %v565_v1  ;;  %503 = vmatprep.mubr.msk.bf16.mxu0 (!%p206_p3), %vm566_vm0, %v565_v1  ;;  %v536_v4 = vld [vmem:[%s670_s3 + $0x18] sm:$0xff] (!%p206_p3)   ;;  %v537_v5 = vld [vmem:[%s670_s3 + $0x20] sm:$0xff] (!%p206_p3)   ;;  %v538_v6 = vld [vmem:[%s670_s3 + $0x28] sm:$0xff] (!%p206_p3)  }
   0x8   : > { %488 = vmatpush3.bf16.msra.mxu0 (!%p206_p3), %v533_v0  ;;  %v465_v8 = vld [vmem:[%s668_s1] ss:$0 sm:$0xff] (!%p206_p3)  ;;  %v539_v10 = vld [vmem:[%s670_s3 + $0x30] sm:$0xff] (!%p206_p3)   ;;  %v540_v13 = vld [vmem:[%s670_s3 + $0x38] sm:$0xff] (!%p206_p3)  }
   0x9   : > { %489 = vmatprep.subr.bf16.mxu0 (!%p206_p3), %v565_v1  ;;  %v466_v11 = vld [vmem:[%s669_s2] ss:$0 sm:$0xff] (!%p206_p3) }
   0xa   : > { %v467_v15 = vld [vmem:[%s671_s4] ss:$0 sm:$0xff] (!%p206_p3) }
   0xc   : > { %490 = vmatpush3.bf16.msra.mxu0 (!%p206_p3), %v534_v2 }
   0xd   : > { %491 = vmatprep.subr.bf16.mxu0 (!%p206_p3), %v565_v1 }
   0xe   : > { %s678_s18 = smov (!%p237_p4, %s555_s18), 1 }
   0xf   : > { %s463_s30 = sshll.u32 %s678_s18, 3  ;;  %s464_s27 = sshll.u32 %s678_s18, 2 }
  0x10   : > { %492 = vmatpush3.bf16.msra.mxu0 %v535_v3  ;;  %s243_s10 = scalar_lea.vmem %s667_s0, %s463_s30  ;;  %s250_s30 = scalar_lea.vmem %s672_s5, %s464_s27 }
  0x11   : > { %493 = vmatprep.subr.bf16.mxu0 %v565_v1  ;;  %v252_v7 = vld [vmem:[%s243_s10] sm:$0xff] }
  0x12   : > { %v260_v9 = vmul.f32 %v465_v8, %v252_v7 }
  0x14   : > { %494 = vmatpush3.bf16.msra.mxu0 %v536_v4  ;;  %v268_v12 = vadd.f32 %v466_v11, %v260_v9 }
  0x15   : > { %495 = vmatprep.subr.bf16.mxu0 %v565_v1 }
  0x16   : > { %v269_v14 = vpack.c.bf16 %v268_v12, %v268_v12 }
  0x18   : > { %496 = vmatpush3.bf16.msra.mxu0 %v537_v5 }
  0x19   : > { %497 = vmatprep.subr.bf16.mxu0 %v565_v1 }
  0x1c   : > { %498 = vmatpush3.bf16.msra.mxu0 %v538_v6 }
  0x1d   : > { %499 = vmatprep.subr.bf16.mxu0 %v565_v1 }
  0x20   : > { %500 = vmatpush3.bf16.msra.mxu0 %v539_v10 }
  0x21   : > { %501 = vmatprep.subr.bf16.mxu0 %v565_v1 }
  0x24   : > { %502 = vmatpush3.bf16.msra.mxu0 %v540_v13 }
  0x27   : > { %504 = vmatmul.mubr.bf16.vlgmr.msra.gmra.mrb[0].mxu0 %v269_v14 }
  0xfa   : > { %v375_v16 = vpop.f32.mrb[0].mxu0 }
  0xfb   : > { %v376_v17 = vadd.f32 %v467_v15, %v375_v16  ;;  %v505_v18 = vpop.f32.mrb[1].mxu0 }
  0xfc   : > { %v378_v19 = vpop.f32.mrb[2].mxu0 }
  0xfd   : > { %v381_v20 = vmul.f32 0.17677669, %v376_v17  ;;  %v506_v21 = vpop.f32.mrb[3].mxu0 }
  0xff   : > { %v382_v22 = vpack.c.bf16 %v381_v20, %v381_v20 }
 0x101   : > { %383 = vst [vmem:[%s250_s30] sm:$0xf] %v382_v22 }
 0x102 PF: > { %s15_s20 = sadd.s32 1, %s563_s20   ;;  %s673_s18 = smov %s559_s19 }
 0x103   : > { %p12_p5 = scmp.ge.s32.totalorder %s15_s20, 4   ;;  %s674_s19 = smov %s676_s21 }
 0x105   :  { %14 = sbr.rel (!%p12_p5) target bundleno = 2 (0x2), region = 70 }

// kernel: decoder_layer.7
= control target key start
LH: loop header
LB: loop body
LE: loop exit
PB: predicated region body
PF: predicated region fallthrough
CT: control target
= control target key end

     0   :  { %s1127_s27 = smov 0   ;;  %s1129_s28 = smov 0   ;;  %s1232_s0 = inlined_call_operand.vmem [shape: f32[2,8,128], index: 0, kind: input, shape index: {}]   ;;  %s1233_s1 = inlined_call_operand.vmem [shape: bf16[2,8,128], index: 1, kind: input, shape index: {}]   ;;  %s1234_s2 = inlined_call_operand.vmem [shape: bf16[2,8,128], index: 2, kind: input, shape index: {}]   ;;  %s1235_s3 = inlined_call_operand.vmem [shape: bf16[2,8,128], index: 3, kind: input, shape index: {}]   ;;  %s1236_s4 = inlined_call_operand.vmem [shape: bf16[128,128], index: 4, kind: input, shape index: {}]   ;;  %s1237_s5 = inlined_call_operand.vmem [shape: f32[1,128], index: 5, kind: input, shape index: {}]   ;;  %s1238_s6 = inlined_call_operand.vmem [shape: f32[2,8,128], index: 6, kind: output, shape index: {0}]   ;;  %s1239_s7 = inlined_call_operand.vmem [shape: f32[2,1,8,128], index: 7, kind: output, shape index: {1}]   ;;  %s1240_s8 = inlined_call_operand.vmem [shape: f32[2,1,8,128], index: 8, kind: output, shape index: {2}]  }
   0x1   :  { %s1131_s29 = smov 0  }
   0x2 LB: > { %s38_s30 = sadd.s32 1, %s1072_s28  ;;  %p945_p0 = scmp.ge.s32.totalorder %s1076_s29, 1  ;;  %s1076_s29 = sphi %s1131_s29, %s19_s29   ;;  %s1072_s28 = sphi %s1129_s28, %s1242_s28   ;;  %s1068_s27 = sphi %s1127_s27, %s1241_s27  }
   0x3   : > { %p40_p1 = scmp.ge.s32.totalorder %s38_s30, 2  ;;  %p338_p2 = scmp.lt.s32.totalorder %s1076_s29, 3 }
   0x5   : > { %s1244_s30 = smov (%p40_p1, %s38_s30), 0  ;;  %p339_p3 = pnand %p945_p0, %p338_p2 }
   0x6   : > { %p411_p4 = scmp.lt.s32.totalorder (!%p339_p3), %s1068_s27, 1  ;;  %v1078_v0 = vmov (!%p339_p3), 0.0   ;;  %vm1079_vm0 = vmmov (!%p339_p3), 0   ;;  %vm465_vm1 = vcmask (!%p339_p3), 7168   ;;  %v1080_v3 = vmov (!%p339_p3), -inf   ;;  %v1040_v24 = vld [vmem:[%s1236_s4] sm:$0xff] (!%p339_p3)  }
   0x7   : > { %342 = sbr.rel (%p339_p3) target bundleno = 1052 (0x41c), region = 44  ;;  %978 = vmatprep.subr.bf16.mxu0 (!%p339_p3), %v1078_v0  ;;  %980 = vmatprep.mubr.msk.bf16.mxu0 (!%p339_p3), %vm1079_vm0, %v1078_v0  ;;  %466 = vst.msk [vmem:[#allocation2] sm:$0xff] (!%p339_p3), %vm465_vm1, %v1080_v3  ;;  %467 = vst.msk [vmem:[#allocation3] sm:$0xff] (!%p339_p3), %vm465_vm1, %v1078_v0  ;;  %vm513_vm2 = vcmask (!%p339_p3), 64512   ;;  %v1081_v9 = vmov (!%p339_p3), 0   ;;  %vm548_vm3 = vcmask (!%p339_p3), 1043456  }
   0x8   : > { %990 = vmatprep.subr.bf16.mxu1 (!%p339_p3), %v1078_v0  ;;  %1006 = vmatprep.mubr.msk.bf16.mxu1 (!%p339_p3), %vm1079_vm0, %v1078_v0  ;;  %v1041_v25 = vld [vmem:[%s1236_s4 + $0x8] sm:$0xff] (!%p339_p3)   ;;  %v1042_v26 = vld [vmem:[%s1236_s4 + $0x10] sm:$0xff] (!%p339_p3)   ;;  %v1043_v27 = vld [vmem:[%s1236_s4 + $0x18] sm:$0xff] (!%p339_p3)  }
   0x9   : > { %1038 = vset.pattern.permute.xlu0 (!%p339_p3), %v1081_v9  ;;  %1039 = vset.pattern.permute.xlu1 (!%p339_p3), %v1081_v9  ;;  %v1044_v28 = vld [vmem:[%s1236_s4 + $0x20] sm:$0xff] (!%p339_p3)   ;;  %v1045_v29 = vld [vmem:[%s1236_s4 + $0x28] sm:$0xff] (!%p339_p3)   ;;  %v1046_v30 = vld [vmem:[%s1236_s4 + $0x30] sm:$0xff] (!%p339_p3)  }
   0xa   : > { %991 = vmatpush3.bf16.msra.mxu1 (!%p339_p3), %v1040_v24  ;;  %v1047_v37 = vld [vmem:[%s1236_s4 + $0x38] sm:$0xff] (!%p339_p3)   ;;  %v954_v48 = vld [vmem:[%s1237_s5] ss:$0 sm:$0xff] (!%p339_p3) }
   0xb   : > { %992 = vmatprep.subr.bf16.mxu1 (!%p339_p3), %v1078_v0 }
   0xe   : > { %s1246_s27 = smov (!%p411_p4, %s1068_s27), 1  ;;  %v512_v10 = vld [vmem:[#allocation2] sm:$0xff]  ;;  %993 = vmatpush3.bf16.msra.mxu1 %v1041_v25  ;;  %v529_v31 = vld [vmem:[#allocation3] sm:$0xff] }
   0xf   : > { %s1152_s9 = sshll.u32 %s1246_s27, 2  ;;  %994 = vmatprep.subr.bf16.mxu1 %v1078_v0  ;;  %s946_s17 = sshll.u32 %s1246_s27, 3 }
  0x10   : > { %s431_s12 = scalar_lea.vmem %s1234_s2, %s1152_s9  ;;  %s424_s15 = scalar_lea.vmem %s1233_s1, %s1152_s9 }
  0x11   : > { %v470_v1 = vld [vmem:[%s431_s12] sm:$0xf]  ;;  %s438_s18 = scalar_lea.vmem %s1235_s3, %s1152_s9  ;;  %s417_s20 = scalar_lea.vmem %s1232_s0, %s946_s17 }
  0x12   : > { %979 = vmatpush3.bf16.xpose.msra.mxu0 %v470_v1  ;;  %v469_v2 = vld [vmem:[%s424_s15] sm:$0xf]  ;;  %995 = vmatpush3.bf16.msra.mxu1 %v1042_v26  ;;  %s445_s25 = scalar_lea.vmem %s1238_s6, %s946_s17  ;;  %s452_s9 = scalar_lea.vmem %s1239_s7, %s946_s17 }
  0x13   : > { %984 = vmatprep.subr.bf16.mxu0 %v1078_v0  ;;  %v471_v14 = vld [vmem:[%s438_s18] sm:$0xf]  ;;  %996 = vmatprep.subr.bf16.mxu1 %v1078_v0  ;;  %s459_s12 = scalar_lea.vmem %s1240_s8, %s946_s17 }
  0x14   : > { %v550_v15 = vsel %vm548_vm3, %v471_v14, 0  ;;  %v719_v50 = vld [vmem:[%s417_s20] sm:$0xff] }
  0x16   : > { %997 = vmatpush3.bf16.msra.mxu1 %v1043_v27 }
  0x17   : > { %998 = vmatprep.subr.bf16.mxu1 %v1078_v0 }
  0x19   : > { %981 = vmatmul.mubr.bf16.vlgmr.msra.gmra.mrb[0].mxu0 %v469_v2 }
  0x1a   : > { %986 = vmatprep.mubr.msk.bf16.mxu0 %vm1079_vm0, %v1078_v0  ;;  %985 = vmatpush3.bf16.msra.mxu0 %v550_v15 }
  0x1b   : > { %999 = vmatpush3.bf16.msra.mxu1 %v1044_v28 }
  0x1c   : > { %1000 = vmatprep.subr.bf16.mxu1 %v1078_v0 }
  0x1f   : > { %1001 = vmatpush3.bf16.msra.mxu1 %v1045_v29 }
  0x20   : > { %1002 = vmatprep.subr.bf16.mxu1 %v1078_v0 }
  0x23   : > { %1003 = vmatpush3.bf16.msra.mxu1 %v1046_v30 }
  0x24   : > { %1004 = vmatprep.subr.bf16.mxu1 %v1078_v0 }
  0x27   : > { %1005 = vmatpush3.bf16.msra.mxu1 %v1047_v37 }
  0xec   : > { %v506_v4 = vpop.f32.mrb[0].mxu0 }
  0xed   : > { %v982_v5 = vpop.f32.mrb[1].mxu0  ;;  %v514_v6 = vsel %vm513_vm2, %v506_v4, -inf }
  0xee   : > { %515 = vmax.xlane.f32.xlu0 %v514_v6  ;;  %v509_v7 = vpop.f32.mrb[2].mxu0 }
  0xef   : > { %v983_v8 = vpop.f32.mrb[3].mxu0 }
 0x17b   : > { %v516_v11 = vpop.xlane.xlu0 %515 }
 0x17c   : > { %v517_v12 = vmax.f32 %v512_v10, %v516_v11 }
 0x17e   : > { %v518_v13 = vsub.f32 %v512_v10, %v517_v12  ;;  %594 = vst.msk [vmem:[#allocation2] sm:$0xff] %vm465_vm1, %v517_v12  ;;  %523 = vperm.xlu0 %1038, %v517_v12  }
 0x180   : > { %v519_v22 = vmul.f32 1.442695, %v518_v13 }
 0x1fd   : > { %v524_v16 = vpop.permute.xlu0 %523 }
 0x1fe   : > { %v526_v17 = vsub.f32 %v506_v4, %v524_v16 }
 0x200   : > { %v527_v18 = vmul.f32 1.442695, %v526_v17 }
 0x202   : > { %1048 = vpow2.f32 %v527_v18 }
 0x203   : > { %1050 = vpow2.f32 %v519_v22 }
 0x20c   : > { %v1049_v19 = vpop.eup %1048 }
 0x20d   : > { %v531_v20 = vsel %vm513_vm2, %v1049_v19, 0.0  ;;  %v544_v21 = vpack.c.bf16 %v1049_v19, %v1049_v19  ;;  %v1051_v23 = vpop.eup %1050 }
 0x20e   : > { %532 = vadd.xlane.f32.xlu1 %v531_v20  ;;  %v530_v32 = vmul.f32 %v1051_v23, %v529_v31 }
 0x20f   : > { %987 = vmatmul.mubr.msk.bf16.vlgmr.msra.gmra.mrb[4].mxu0 %vm513_vm2, %v544_v21 }
 0x21f   : > { %540 = vperm.xlu1 %1039, %v1051_v23  }
 0x29b   : > { %v533_v33 = vpop.xlane.xlu1 %532 }
 0x29c   : > { %v534_v34 = vadd.f32 %v533_v33, %v530_v32 }
 0x29e   : > { %536 = vst.msk [vmem:[#allocation3] sm:$0xff] %vm465_vm1, %v534_v34 }
 0x29f   : > { %v541_v42 = vpop.permute.xlu1 %540 }
 0x2a0   : > { %v543_v43 = vmul.f32 0.0, %v541_v42 }
 0x2a5   : > { %v599_v35 = vld [vmem:[#allocation3] sm:$0xff] }
 0x2a6   : > { %1052 = vrcp.f32 %v599_v35 }
 0x2b0   : > { %v1053_v36 = vpop.eup %1052 }
 0x2b1   : > { %603 = vperm.xlu1 %1039, %v1053_v36  }
 0x2e2   : > { %v586_v38 = vpop.f32.mrb[4].mxu0 }
 0x2e3   : > { %v988_v39 = vpop.f32.mrb[5].mxu0  ;;  %v592_v44 = vadd.f32 %v586_v38, %v543_v43 }
 0x2e4   : > { %v589_v40 = vpop.f32.mrb[6].mxu0 }
 0x2e5   : > { %v989_v41 = vpop.f32.mrb[7].mxu0 }
 0x330   : > { %v604_v45 = vpop.permute.xlu1 %603 }
 0x331   : > { %v606_v46 = vmul.f32 %v604_v45, %v592_v44 }
 0x333   : > { %v607_v47 = vpack.c.bf16 %v606_v46, %v606_v46 }
 0x335   : > { %1007 = vmatmul.mubr.bf16.vlgmr.msra.gmra.mrb[0].mxu1 %v607_v47 }
 0x408   : > { %v713_v49 = vpop.f32.mrb[0].mxu1 }
 0x409   : > { %v714_v51 = vadd.f32 %v954_v48, %v713_v49  ;;  %v1008_v52 = vpop.f32.mrb[1].mxu1 }
 0x40a   : > { %v716_v53 = vpop.f32.mrb[2].mxu1 }
 0x40b   : > { %v720_v54 = vadd.f32 %v719_v50, %v714_v51  ;;  %v1009_v55 = vpop.f32.mrb[3].mxu1 }
 0x40d   : > { %721 = vst [vmem:[%s445_s25] sm:$0xff] %v720_v54  ;;  %v722_v56 = vrot.slane %v720_v54, 4  ;;  %v728_v57 = vmul.f32 %v720_v54, %v720_v54 }
 0x40f   : > { %v723_v58 = vadd.f32 %v722_v56, %v720_v54  ;;  %v729_v59 = vrot.slane %v728_v57, 4 }
 0x411   : > { %v724_v60 = vrot.slane %v723_v58, 2  ;;  %v730_v61 = vadd.f32 %v729_v59, %v728_v57 }
 0x413   : > { %v725_v62 = vadd.f32 %v724_v60, %v723_v58  ;;  %v731_v63 = vrot.slane %v730_v61, 2 }
 0x415   : > { %v726_v0 = vrot.slane %v725_v62, 1  ;;  %v732_v1 = vadd.f32 %v731_v63, %v730_v61 }
 0x417   : > { %v727_v2 = vadd.f32 %v726_v0, %v725_v62  ;;  %v733_v3 = vrot.slane %v732_v1, 1 }
 0x419   : > { %v734_v4 = vadd.f32 %v733_v3, %v732_v1  ;;  %735 = vst [vmem:[%s452_s9] sm:$0xff] %v727_v2 }
 0x41b   : > { %736 = vst [vmem:[%s459_s12] sm:$0xff] %v734_v4 }
 0x41c PF: > { %s19_s29 = sadd.s32 1, %s1076_s29   ;;  %s1241_s27 = smov %s1072_s28 }
 0x41d   : > { %p16_p5 = scmp.ge.s32.totalorder %s19_s29, 4   ;;  %s1242_s28 = smov %s1244_s30 }
 0x41f   :  { %18 = sbr.rel (!%p16_p5) target bundleno = 2 (0x2), region = 115 }

// kernel: decoder_layer.9
= control target key start
LH: loop header
LB: loop body
LE: loop exit
PB: predicated region body
PF: predicated region fallthrough
CT: control target
= control target key end

     0   :  { %s829_s21 = smov 0   ;;  %s831_s22 = smov 0   ;;  %s928_s0 = inlined_call_operand.vmem [shape: bf16[2,8,128], index: 0, kind: input, shape index: {}]   ;;  %s929_s1 = inlined_call_operand.vmem [shape: bf16[128,128], index: 1, kind: input, shape index: {}]   ;;  %s930_s2 = inlined_call_operand.vmem [shape: f32[1,128], index: 2, kind: input, shape index: {}]   ;;  %s931_s3 = inlined_call_operand.vmem [shape: bf16[128,128], index: 3, kind: input, shape index: {}]   ;;  %s932_s4 = inlined_call_operand.vmem [shape: f32[1,128], index: 4, kind: input, shape index: {}]   ;;  %s933_s5 = inlined_call_operand.vmem [shape: bf16[2,8,128], index: 5, kind: output, shape index: {0}]   ;;  %s934_s6 = inlined_call_operand.vmem [shape: bf16[2,8,128], index: 6, kind: output, shape index: {1}]  }
   0x1   :  { %s833_s23 = smov 0  }
   0x2 LB: > { %s29_s24 = sadd.s32 1, %s786_s22  ;;  %p644_p0 = scmp.ge.s32.totalorder %s790_s23, 1  ;;  %s790_s23 = sphi %s833_s23, %s17_s23   ;;  %s786_s22 = sphi %s831_s22, %s936_s22   ;;  %s782_s21 = sphi %s829_s21, %s935_s21  }
   0x3   : > { %p31_p1 = scmp.ge.s32.totalorder %s29_s24, 2  ;;  %p235_p2 = scmp.lt.s32.totalorder %s790_s23, 3 }
   0x5   : > { %s938_s24 = smov (%p31_p1, %s29_s24), 0  ;;  %p236_p3 = pnand %p644_p0, %p235_p2 }
   0x6   : > { %v752_v0 = vld [vmem:[%s929_s1] sm:$0xff] (!%p236_p3)   ;;  %v792_v1 = vmov (!%p236_p3), 0.0   ;;  %v754_v3 = vld [vmem:[%s929_s1 + $0x8] sm:$0xff] (!%p236_p3)   ;;  %vm793_vm0 = vmmov (!%p236_p3), 0   ;;  %v756_v5 = vld [vmem:[%s929_s1 + $0x10] sm:$0xff] (!%p236_p3)   ;;  %p276_p4 = scmp.lt.s32.totalorder (!%p236_p3), %s782_s21, 1 }
   0x7   : > { %239 = sbr.rel (%p236_p3) target bundleno = 257 (0x101), region = 40  ;;  %686 = vmatprep.subr.bf16.mxu0 (!%p236_p3), %v792_v1  ;;  %706 = vmatprep.subr.bf16.mxu1 (!%p236_p3), %v792_v1  ;;  %v753_v2 = vld [vmem:[%s931_s3] sm:$0xff] (!%p236_p3)   ;;  %v755_v4 = vld [vmem:[%s931_s3 + $0x8] sm:$0xff] (!%p236_p3)   ;;  %v757_v6 = vld [vmem:[%s931_s3 + $0x10] sm:$0xff] (!%p236_p3)  }
   0x8   : > { %687 = vmatpush3.bf16.msra.mxu0 (!%p236_p3), %v752_v0  ;;  %702 = vmatprep.mubr.msk.bf16.mxu0 (!%p236_p3), %vm793_vm0, %v792_v1  ;;  %v758_v7 = vld [vmem:[%s929_s1 + $0x18] sm:$0xff] (!%p236_p3)   ;;  %v760_v9 = vld [vmem:[%s929_s1 + $0x20] sm:$0xff] (!%p236_p3)   ;;  %v762_v11 = vld [vmem:[%s929_s1 + $0x28] sm:$0xff] (!%p236_p3)  }
   0x9   : > { %707 = vmatpush3.bf16.msra.mxu1 (!%p236_p3), %v753_v2  ;;  %688 = vmatprep.subr.bf16.mxu0 (!%p236_p3), %v792_v1  ;;  %v759_v8 = vld [vmem:[%s931_s3 + $0x18] sm:$0xff] (!%p236_p3)   ;;  %v761_v10 = vld [vmem:[%s931_s3 + $0x20] sm:$0xff] (!%p236_p3)   ;;  %v763_v12 = vld [vmem:[%s931_s3 + $0x28] sm:$0xff] (!%p236_p3)  }
   0xa   : > { %708 = vmatprep.subr.bf16.mxu1 (!%p236_p3), %v792_v1  ;;  %722 = vmatprep.mubr.msk.bf16.mxu1 (!%p236_p3), %vm793_vm0, %v792_v1  ;;  %v764_v13 = vld [vmem:[%s929_s1 + $0x30] sm:$0xff] (!%p236_p3)   ;;  %v766_v15 = vld [vmem:[%s929_s1 + $0x38] sm:$0xff] (!%p236_p3)   ;;  %v648_v18 = vld [vmem:[%s930_s2] ss:$0 sm:$0xff] (!%p236_p3) }
   0xb   : > { %v765_v14 = vld [vmem:[%s931_s3 + $0x30] sm:$0xff] (!%p236_p3)   ;;  %v767_v16 = vld [vmem:[%s931_s3 + $0x38] sm:$0xff] (!%p236_p3)   ;;  %v657_v19 = vld [vmem:[%s932_s4] ss:$0 sm:$0xff] (!%p236_p3) }
   0xc   : > { %689 = vmatpush3.bf16.msra.mxu0 (!%p236_p3), %v754_v3 }
   0xd   : > { %709 = vmatpush3.bf16.msra.mxu1 (!%p236_p3), %v755_v4  ;;  %690 = vmatprep.subr.bf16.mxu0 (!%p236_p3), %v792_v1 }
   0xe   : > { %710 = vmatprep.subr.bf16.mxu1 %v792_v1  ;;  %s940_s21 = smov (!%p276_p4, %s782_s21), 1 }
   0xf   : > { %s893_s9 = sshll.u32 %s940_s21, 2 }
  0x10   : > { %691 = vmatpush3.bf16.msra.mxu0 %v756_v5  ;;  %s282_s16 = scalar_lea.vmem %s928_s0, %s893_s9  ;;  %s289_s26 = scalar_lea.vmem %s933_s5, %s893_s9 }
  0x11   : > { %711 = vmatpush3.bf16.msra.mxu1 %v757_v6  ;;  %692 = vmatprep.subr.bf16.mxu0 %v792_v1  ;;  %v298_v17 = vld [vmem:[%s282_s16] sm:$0xf]  ;;  %s296_s29 = scalar_lea.vmem %s934_s6, %s893_s9 }
  0x12   : > { %712 = vmatprep.subr.bf16.mxu1 %v792_v1 }
  0x14   : > { %693 = vmatpush3.bf16.msra.mxu0 %v758_v7 }
  0x15   : > { %713 = vmatpush3.bf16.msra.mxu1 %v759_v8  ;;  %694 = vmatprep.subr.bf16.mxu0 %v792_v1 }
  0x16   : > { %714 = vmatprep.subr.bf16.mxu1 %v792_v1 }
  0x18   : > { %695 = vmatpush3.bf16.msra.mxu0 %v760_v9 }
  0x19   : > { %715 = vmatpush3.bf16.msra.mxu1 %v761_v10  ;;  %696 = vmatprep.subr.bf16.mxu0 %v792_v1 }
  0x1a   : > { %716 = vmatprep.subr.bf16.mxu1 %v792_v1 }
  0x1c   : > { %697 = vmatpush3.bf16.msra.mxu0 %v762_v11 }
  0x1d   : > { %717 = vmatpush3.bf16.msra.mxu1 %v763_v12  ;;  %698 = vmatprep.subr.bf16.mxu0 %v792_v1 }
  0x1e   : > { %718 = vmatprep.subr.bf16.mxu1 %v792_v1 }
  0x20   : > { %699 = vmatpush3.bf16.msra.mxu0 %v764_v13 }
  0x21   : > { %719 = vmatpush3.bf16.msra.mxu1 %v765_v14  ;;  %700 = vmatprep.subr.bf16.mxu0 %v792_v1 }
  0x22   : > { %720 = vmatprep.subr.bf16.mxu1 %v792_v1 }
  0x24   : > { %701 = vmatpush3.bf16.msra.mxu0 %v766_v15 }
  0x25   : > { %721 = vmatpush3.bf16.msra.mxu1 %v767_v16 }
  0x27   : > { %703 = vmatmul.mubr.bf16.vlgmr.msra.gmra.mrb[0].mxu0 %v298_v17 }
  0x28   : > { %723 = vmatmul.mubr.bf16.vlgmr.msra.gmra.mrb[0].mxu1 %v298_v17 }
  0xfa   : > { %v404_v20 = vpop.f32.mrb[0].mxu0 }
  0xfb   : > { %v405_v21 = vadd.f32 %v648_v18, %v404_v20  ;;  %v517_v22 = vpop.f32.mrb[0].mxu1  ;;  %v704_v23 = vpop.f32.mrb[1].mxu0 }
  0xfc   : > { %v518_v24 = vadd.f32 %v657_v19, %v517_v22  ;;  %v724_v25 = vpop.f32.mrb[1].mxu1  ;;  %v407_v26 = vpop.f32.mrb[2].mxu0 }
  0xfd   : > { %v410_v27 = vpack.c.bf16 %v405_v21, %v405_v21  ;;  %v520_v28 = vpop.f32.mrb[2].mxu1  ;;  %v705_v29 = vpop.f32.mrb[3].mxu0 }
  0xfe   : > { %v523_v30 = vpack.c.bf16 %v518_v24, %v518_v24  ;;  %v725_v31 = vpop.f32.mrb[3].mxu1 }
  0xff   : > { %411 = vst [vmem:[%s289_s26] sm:$0xf] %v410_v27 }
 0x100   : > { %524 = vst [vmem:[%s296_s29] sm:$0xf] %v523_v30 }
 0x101 PF: > { %s17_s23 = sadd.s32 1, %s790_s23   ;;  %s935_s21 = smov %s786_s22 }
 0x102   : > { %p14_p5 = scmp.ge.s32.totalorder %s17_s23, 4   ;;  %s936_s22 = smov %s938_s24 }
 0x104   :  { %16 = sbr.rel (!%p14_p5) target bundleno = 2 (0x2), region = 82 }

// kernel: decoder_layer.6
= control target key start
LH: loop header
LB: loop body
LE: loop exit
PB: predicated region body
PF: predicated region fallthrough
CT: control target
= control target key end

     0   :  { %s1228_s17 = smov 0   ;;  %s1230_s18 = smov 0   ;;  %s1388_s0 = inlined_call_operand.vmem [shape: f32[2,8,128], index: 0, kind: input, shape index: {}]   ;;  %s1389_s1 = inlined_call_operand.vmem [shape: f32[1,128], index: 1, kind: input, shape index: {}]   ;;  %s1390_s2 = inlined_call_operand.vmem [shape: f32[1,128], index: 2, kind: input, shape index: {}]   ;;  %s1391_s3 = inlined_call_operand.vmem [shape: bf16[128,128], index: 3, kind: input, shape index: {}]   ;;  %s1392_s4 = inlined_call_operand.vmem [shape: f32[1,128], index: 4, kind: input, shape index: {}]   ;;  %s1393_s5 = inlined_call_operand.vmem [shape: bf16[128,128], index: 5, kind: input, shape index: {}]   ;;  %s1394_s6 = inlined_call_operand.vmem [shape: f32[1,128], index: 6, kind: input, shape index: {}]   ;;  %s1395_s7 = inlined_call_operand.vmem [shape: bf16[128,128], index: 7, kind: input, shape index: {}]   ;;  %s1396_s8 = inlined_call_operand.vmem [shape: f32[1,128], index: 8, kind: input, shape index: {}]   ;;  %s1397_s9 = inlined_call_operand.vmem [shape: bf16[2,8,128], index: 9, kind: output, shape index: {0}]   ;;  %s1398_s10 = inlined_call_operand.vmem [shape: bf16[2,8,128], index: 10, kind: output, shape index: {1}]   ;;  %s1399_s11 = inlined_call_operand.vmem [shape: bf16[2,8,128], index: 11, kind: output, shape index: {2}]  }
   0x1   :  { %s1232_s19 = smov 0  }
   0x2 LB: > { %s34_s20 = sadd.s32 1, %s1160_s18  ;;  %p969_p0 = scmp.ge.s32.totalorder %s1164_s19, 1  ;;  %s1164_s19 = sphi %s1232_s19, %s22_s19   ;;  %s1160_s18 = sphi %s1230_s18, %s1401_s18   ;;  %s1156_s17 = sphi %s1228_s17, %s1400_s17  }
   0x3   : > { %p36_p1 = scmp.ge.s32.totalorder %s34_s20, 2  ;;  %p364_p2 = scmp.lt.s32.totalorder %s1164_s19, 3 }
   0x5   : > { %s1403_s20 = smov (%p36_p1, %s34_s20), 0  ;;  %p365_p3 = pnand %p969_p0, %p364_p2 }
   0x6   : > { %v1118_v0 = vld [vmem:[%s1391_s3] sm:$0xff] (!%p365_p3)   ;;  %v1166_v1 = vmov (!%p365_p3), 0.0   ;;  %v1119_v2 = vld [vmem:[%s1391_s3 + $0x8] sm:$0xff] (!%p365_p3)   ;;  %vm1167_vm0 = vmmov (!%p365_p3), 0   ;;  %p422_p4 = scmp.lt.s32.totalorder (!%p365_p3), %s1156_s17, 1  ;;  %v1120_v3 = vld [vmem:[%s1391_s3 + $0x10] sm:$0xff] (!%p365_p3)  }
   0x7   : > { %368 = sbr.rel (%p365_p3) target bundleno = 288 (0x120), region = 56  ;;  %1032 = vmatprep.subr.bf16.mxu0 (!%p365_p3), %v1166_v1  ;;  %1052 = vmatprep.subr.bf16.mxu1 (!%p365_p3), %v1166_v1  ;;  %v1126_v4 = vld [vmem:[%s1393_s5] sm:$0xff] (!%p365_p3)   ;;  %v1121_v5 = vld [vmem:[%s1391_s3 + $0x18] sm:$0xff] (!%p365_p3)   ;;  %v1128_v6 = vld [vmem:[%s1393_s5 + $0x8] sm:$0xff] (!%p365_p3)  }
   0x8   : > { %1033 = vmatpush3.bf16.msra.mxu0 (!%p365_p3), %v1118_v0  ;;  %1048 = vmatprep.mubr.msk.bf16.mxu0 (!%p365_p3), %vm1167_vm0, %v1166_v1  ;;  %v1122_v7 = vld [vmem:[%s1391_s3 + $0x20] sm:$0xff] (!%p365_p3)   ;;  %v1130_v8 = vld [vmem:[%s1393_s5 + $0x10] sm:$0xff] (!%p365_p3)   ;;  %v1123_v9 = vld [vmem:[%s1391_s3 + $0x28] sm:$0xff] (!%p365_p3)  }
   0x9   : > { %1034 = vmatprep.subr.bf16.mxu0 (!%p365_p3), %v1166_v1  ;;  %1068 = vmatprep.mubr.msk.bf16.mxu1 (!%p365_p3), %vm1167_vm0, %v1166_v1  ;;  %v974_v11 = vld [vmem:[%s1389_s1] ss:$0 sm:$0xff] (!%p365_p3)  ;;  %v1132_v12 = vld [vmem:[%s1393_s5 + $0x18] sm:$0xff] (!%p365_p3)   ;;  %v1124_v13 = vld [vmem:[%s1391_s3 + $0x30] sm:$0xff] (!%p365_p3)  }
   0xa   : > { %1053 = vmatpush3.bf16.msra.mxu1 (!%p365_p3), %v1126_v4  ;;  %v975_v15 = vld [vmem:[%s1390_s2] ss:$0 sm:$0xff] (!%p365_p3)  ;;  %v1125_v18 = vld [vmem:[%s1391_s3 + $0x38] sm:$0xff] (!%p365_p3)   ;;  %v1136_v19 = vld [vmem:[%s1393_s5 + $0x28] sm:$0xff] (!%p365_p3)  }
   0xb   : > { %1054 = vmatprep.subr.bf16.mxu1 (!%p365_p3), %v1166_v1  ;;  %v1134_v16 = vld [vmem:[%s1393_s5 + $0x20] sm:$0xff] (!%p365_p3)   ;;  %v1138_v22 = vld [vmem:[%s1393_s5 + $0x30] sm:$0xff] (!%p365_p3)   ;;  %v1129_v23 = vld [vmem:[%s1395_s7 + $0x8] sm:$0xff] (!%p365_p3)  }
   0xc   : > { %1035 = vmatpush3.bf16.msra.mxu0 (!%p365_p3), %v1119_v2  ;;  %v1127_v21 = vld [vmem:[%s1395_s7] sm:$0xff] (!%p365_p3)   ;;  %v1140_v24 = vld [vmem:[%s1393_s5 + $0x38] sm:$0xff] (!%p365_p3)   ;;  %v1131_v25 = vld [vmem:[%s1395_s7 + $0x10] sm:$0xff] (!%p365_p3)  }
   0xd   : > { %1036 = vmatprep.subr.bf16.mxu0 (!%p365_p3), %v1166_v1  ;;  %v1133_v26 = vld [vmem:[%s1395_s7 + $0x18] sm:$0xff] (!%p365_p3)   ;;  %v1135_v27 = vld [vmem:[%s1395_s7 + $0x20] sm:$0xff] (!%p365_p3)   ;;  %v1137_v28 = vld [vmem:[%s1395_s7 + $0x28] sm:$0xff] (!%p365_p3)  }
   0xe   : > { %s1405_s17 = smov (!%p422_p4, %s1156_s17), 1  ;;  %1055 = vmatpush3.bf16.msra.mxu1 %v1128_v6  ;;  %v1139_v29 = vld [vmem:[%s1395_s7 + $0x30] sm:$0xff]   ;;  %v1141_v30 = vld [vmem:[%s1395_s7 + $0x38] sm:$0xff]   ;;  %v976_v31 = vld [vmem:[%s1392_s4] ss:$0 sm:$0xff] }
   0xf   : > { %s970_s12 = sshll.u32 %s1405_s17, 3  ;;  %1056 = vmatprep.subr.bf16.mxu1 %v1166_v1  ;;  %s971_s15 = sshll.u32 %s1405_s17, 2  ;;  %v985_v39 = vld [vmem:[%s1394_s6] ss:$0 sm:$0xff] }
  0x10   : > { %1037 = vmatpush3.bf16.msra.mxu0 %v1120_v3  ;;  %s428_s23 = scalar_lea.vmem %s1388_s0, %s970_s12  ;;  %s435_s22 = scalar_lea.vmem %s1397_s9, %s971_s15  ;;  %v994_v46 = vld [vmem:[%s1396_s8] ss:$0 sm:$0xff] }
  0x11   : > { %1038 = vmatprep.subr.bf16.mxu0 %v1166_v1  ;;  %v451_v10 = vld [vmem:[%s428_s23] sm:$0xff]  ;;  %s442_s26 = scalar_lea.vmem %s1398_s10, %s971_s15  ;;  %s449_s12 = scalar_lea.vmem %s1399_s11, %s971_s15 }
  0x12   : > { %1057 = vmatpush3.bf16.msra.mxu1 %v1130_v8  ;;  %v459_v14 = vmul.f32 %v974_v11, %v451_v10 }
  0x13   : > { %1058 = vmatprep.subr.bf16.mxu1 %v1166_v1 }
  0x14   : > { %1039 = vmatpush3.bf16.msra.mxu0 %v1121_v5  ;;  %v467_v17 = vadd.f32 %v975_v15, %v459_v14 }
  0x15   : > { %1040 = vmatprep.subr.bf16.mxu0 %v1166_v1 }
  0x16   : > { %1059 = vmatpush3.bf16.msra.mxu1 %v1132_v12  ;;  %v468_v20 = vpack.c.bf16 %v467_v17, %v467_v17 }
  0x17   : > { %1060 = vmatprep.subr.bf16.mxu1 %v1166_v1 }
  0x18   : > { %1041 = vmatpush3.bf16.msra.mxu0 %v1122_v7 }
  0x19   : > { %1042 = vmatprep.subr.bf16.mxu0 %v1166_v1 }
  0x1a   : > { %1061 = vmatpush3.bf16.msra.mxu1 %v1134_v16 }
  0x1b   : > { %1062 = vmatprep.subr.bf16.mxu1 %v1166_v1 }
  0x1c   : > { %1043 = vmatpush3.bf16.msra.mxu0 %v1123_v9 }
  0x1d   : > { %1044 = vmatprep.subr.bf16.mxu0 %v1166_v1 }
  0x1e   : > { %1063 = vmatpush3.bf16.msra.mxu1 %v1136_v19 }
  0x1f   : > { %1064 = vmatprep.subr.bf16.mxu1 %v1166_v1 }
  0x20   : > { %1045 = vmatpush3.bf16.msra.mxu0 %v1124_v13 }
  0x21   : > { %1046 = vmatprep.subr.bf16.mxu0 %v1166_v1 }
  0x22   : > { %1065 = vmatpush3.bf16.msra.mxu1 %v1138_v22 }
  0x23   : > { %1066 = vmatprep.subr.bf16.mxu1 %v1166_v1 }
  0x24   : > { %1047 = vmatpush3.bf16.msra.mxu0 %v1125_v18 }
  0x25   : > { %1072 = vmatprep.subr.bf16.mxu0 %v1166_v1 }
  0x26   : > { %1067 = vmatpush3.bf16.msra.mxu1 %v1140_v24 }
  0x27   : > { %1049 = vmatmul.mubr.bf16.vlgmr.msra.gmra.mrb[0].mxu0 %v468_v20 }
  0x28   : > { %1073 = vmatpush3.bf16.msra.mxu0 %v1127_v21  ;;  %1088 = vmatprep.mubr.msk.bf16.mxu0 %vm1167_vm0, %v1166_v1 }
  0x29   : > { %1074 = vmatprep.subr.bf16.mxu0 %v1166_v1  ;;  %1069 = vmatmul.mubr.bf16.vlgmr.msra.gmra.mrb[0].mxu1 %v468_v20 }
  0x2c   : > { %1075 = vmatpush3.bf16.msra.mxu0 %v1129_v23 }
  0x2d   : > { %1076 = vmatprep.subr.bf16.mxu0 %v1166_v1 }
  0x30   : > { %1077 = vmatpush3.bf16.msra.mxu0 %v1131_v25 }
  0x31   : > { %1078 = vmatprep.subr.bf16.mxu0 %v1166_v1 }
  0x34   : > { %1079 = vmatpush3.bf16.msra.mxu0 %v1133_v26 }
  0x35   : > { %1080 = vmatprep.subr.bf16.mxu0 %v1166_v1 }
  0x38   : > { %1081 = vmatpush3.bf16.msra.mxu0 %v1135_v27 }
  0x39   : > { %1082 = vmatprep.subr.bf16.mxu0 %v1166_v1 }
  0x3c   : > { %1083 = vmatpush3.bf16.msra.mxu0 %v1137_v28 }
  0x3d   : > { %1084 = vmatprep.subr.bf16.mxu0 %v1166_v1 }
  0x40   : > { %1085 = vmatpush3.bf16.msra.mxu0 %v1139_v29 }
  0x41   : > { %1086 = vmatprep.subr.bf16.mxu0 %v1166_v1 }
  0x44   : > { %1087 = vmatpush3.bf16.msra.mxu0 %v1141_v30 }
  0x47   : > { %1089 = vmatmul.mubr.bf16.vlgmr.msra.gmra.mrb[4].mxu0 %v468_v20 }
  0xfa   : > { %v574_v32 = vpop.f32.mrb[0].mxu0 }
  0xfb   : > { %v575_v33 = vadd.f32 %v976_v31, %v574_v32  ;;  %v1050_v34 = vpop.f32.mrb[1].mxu0 }
  0xfc   : > { %v577_v35 = vpop.f32.mrb[2].mxu0  ;;  %v688_v40 = vpop.f32.mrb[0].mxu1 }
  0xfd   : > { %v580_v36 = vmul.f32 0.17677669, %v575_v33  ;;  %v1051_v37 = vpop.f32.mrb[3].mxu0  ;;  %v689_v41 = vadd.f32 %v985_v39, %v688_v40  ;;  %v1070_v42 = vpop.f32.mrb[1].mxu1 }
  0xfe   : > { %v691_v43 = vpop.f32.mrb[2].mxu1 }
  0xff   : > { %v581_v38 = vpack.c.bf16 %v580_v36, %v580_v36  ;;  %v694_v44 = vpack.c.bf16 %v689_v41, %v689_v41  ;;  %v1071_v45 = vpop.f32.mrb[3].mxu1 }
 0x101   : > { %582 = vst [vmem:[%s435_s22] sm:$0xf] %v581_v38  ;;  %695 = vst [vmem:[%s442_s26] sm:$0xf] %v694_v44 }
 0x11a   : > { %v801_v47 = vpop.f32.mrb[4].mxu0 }
 0x11b   : > { %v802_v48 = vadd.f32 %v994_v46, %v801_v47  ;;  %v1090_v49 = vpop.f32.mrb[5].mxu0 }
 0x11c   : > { %v804_v50 = vpop.f32.mrb[6].mxu0 }
 0x11d   : > { %v807_v51 = vpack.c.bf16 %v802_v48, %v802_v48  ;;  %v1091_v52 = vpop.f32.mrb[7].mxu0 }
 0x11f   : > { %808 = vst [vmem:[%s449_s12] sm:$0xf] %v807_v51 }
 0x120 PF: > { %s22_s19 = sadd.s32 1, %s1164_s19   ;;  %s1400_s17 = smov %s1160_s18 }
 0x121   : > { %p19_p5 = scmp.ge.s32.totalorder %s22_s19, 4   ;;  %s1401_s18 = smov %s1403_s20 }
 0x123   :  { %21 = sbr.rel (!%p19_p5) target bundleno = 2 (0x2), region = 110 }

// kernel: decoder_layer.11
= control target key start
LH: loop header
LB: loop body
LE: loop exit
PB: predicated region body
PF: predicated region fallthrough
CT: control target
= control target key end

     0   :  { %v442_v1 = vmov 0.0   ;;  %vm443_vm0 = vmmov 0   ;;  %s565_s0 = inlined_call_operand.vmem [shape: f32[16,128], index: 0, kind: input, shape index: {}]   ;;  %s566_s1 = inlined_call_operand.vmem [shape: f32[1,128], index: 1, kind: input, shape index: {}]   ;;  %s567_s2 = inlined_call_operand.vmem [shape: f32[1,128], index: 2, kind: input, shape index: {}]   ;;  %s568_s3 = inlined_call_operand.vmem [shape: bf16[128,128], index: 3, kind: input, shape index: {}]   ;;  %s569_s4 = inlined_call_operand.vmem [shape: f32[1,128], index: 4, kind: input, shape index: {}]   ;;  %s570_s5 = inlined_call_operand.vmem [shape: bf16[128,128], index: 5, kind: input, shape index: {}]   ;;  %s571_s6 = inlined_call_operand.vmem [shape: f32[1,128], index: 6, kind: input, shape index: {}]   ;;  %s572_s7 = inlined_call_operand.hbm [shape: f32[16,128], index: 7, kind: output, shape index: {}]  }
   0x1   :  { %v402_v0 = vld [vmem:[%s568_s3] sm:$0xff]   ;;  %357 = vmatprep.subr.bf16.mxu0 %v442_v1  ;;  %377 = vmatprep.subr.bf16.mxu1 %v442_v1  ;;  %v403_v2 = vld [vmem:[%s568_s3 + $0x8] sm:$0xff]   ;;  %v404_v3 = vld [vmem:[%s568_s3 + $0x10] sm:$0xff]  }
   0x2   :  { %358 = vmatpush3.bf16.msra.mxu0 %v402_v0  ;;  %373 = vmatprep.mubr.msk.bf16.mxu0 %vm443_vm0, %v442_v1  ;;  %v405_v4 = vld [vmem:[%s568_s3 + $0x18] sm:$0xff]   ;;  %v410_v5 = vld [vmem:[%s570_s5] sm:$0xff]   ;;  %v411_v6 = vld [vmem:[%s570_s5 + $0x8] sm:$0xff]  }
   0x3   :  { %359 = vmatprep.subr.bf16.mxu0 %v442_v1  ;;  %393 = vmatprep.mubr.msk.bf16.mxu1 %vm443_vm0, %v442_v1  ;;  %v406_v7 = vld [vmem:[%s568_s3 + $0x20] sm:$0xff]   ;;  %v412_v8 = vld [vmem:[%s570_s5 + $0x10] sm:$0xff]   ;;  %v407_v9 = vld [vmem:[%s568_s3 + $0x28] sm:$0xff]  }
   0x4   :  { %378 = vmatpush3.bf16.msra.mxu1 %v410_v5 }
   0x5   :  { %379 = vmatprep.subr.bf16.mxu1 %v442_v1 }
   0x6   :  { %360 = vmatpush3.bf16.msra.mxu0 %v403_v2 }
   0x7   :  { %361 = vmatprep.subr.bf16.mxu0 %v442_v1 }
   0x8   :  { %380 = vmatpush3.bf16.msra.mxu1 %v411_v6 }
   0x9   :  { %381 = vmatprep.subr.bf16.mxu1 %v442_v1 }
   0xa   :  { %362 = vmatpush3.bf16.msra.mxu0 %v404_v3 }
   0xb   :  { %363 = vmatprep.subr.bf16.mxu0 %v442_v1 }
   0xe   :  { %364 = vmatpush3.bf16.msra.mxu0 %v405_v4 }
   0xf   :  { %365 = vmatprep.subr.bf16.mxu0 %v442_v1 }
  0x10   :  { %12 = vsyncpa [#allocation5], 0  ;;  %v32_v10 = vld [vmem:[%s565_s0] sm:$0xff]  ;;  %v33_v11 = vld [vmem:[%s565_s0 + $0x8] sm:$0xff]  ;;  %382 = vmatpush3.bf16.msra.mxu1 %v412_v8 }
  0x11   :  { %v319_v12 = vld [vmem:[%s566_s1] ss:$0 sm:$0xff]  ;;  %v413_v13 = vld [vmem:[%s570_s5 + $0x18] sm:$0xff]   ;;  %383 = vmatprep.subr.bf16.mxu1 %v442_v1  ;;  %v408_v16 = vld [vmem:[%s568_s3 + $0x30] sm:$0xff]  }
  0x12   :  { %366 = vmatpush3.bf16.msra.mxu0 %v406_v7  ;;  %v41_v14 = vmul.f32 %v319_v12, %v32_v10  ;;  %v42_v15 = vmul.f32 %v319_v12, %v33_v11  ;;  %v320_v17 = vld [vmem:[%s567_s2] ss:$0 sm:$0xff]  ;;  %v409_v21 = vld [vmem:[%s568_s3 + $0x38] sm:$0xff]   ;;  %v415_v22 = vld [vmem:[%s570_s5 + $0x28] sm:$0xff]  }
  0x13   :  { %367 = vmatprep.subr.bf16.mxu0 %v442_v1  ;;  %v414_v18 = vld [vmem:[%s570_s5 + $0x20] sm:$0xff]   ;;  %v416_v24 = vld [vmem:[%s570_s5 + $0x30] sm:$0xff]   ;;  %v417_v25 = vld [vmem:[%s570_s5 + $0x38] sm:$0xff]   ;;  %s444_s5 = smov [#allocation4]  }
  0x14   :  { %384 = vmatpush3.bf16.msra.mxu1 %v413_v13  ;;  %v50_v19 = vadd.f32 %v320_v17, %v41_v14  ;;  %v51_v20 = vadd.f32 %v320_v17, %v42_v15  ;;  %v321_v26 = vld [vmem:[%s569_s4] ss:$0 sm:$0xff]  ;;  %s308_s18 = sshll.u32 %s444_s5, 4  ;;  %s309_s18 = int_to_ptr.vmem [resolvable:$true] %s308_s18 }
  0x15   :  { %385 = vmatprep.subr.bf16.mxu1 %v442_v1  ;;  %v338_v37 = vld [vmem:[%s571_s6] ss:$0 sm:$0xff]  ;;  %s418_s4 = scalar_lea.vmem %s309_s18, 256  ;;  %p423_p1 = scmp.lt.s32.totalorder %s309_s18, %s309_s18 }
  0x16   :  { %368 = vmatpush3.bf16.msra.mxu0 %v407_v9  ;;  %v52_v23 = vpack.c.bf16 %v51_v20, %v50_v19  ;;  %p419_p0 = scmp.ne.s32.totalorder %s309_s18, %s418_s4  ;;  %p424_p2 = scmp.lt.s32.totalorder %s418_s4, %s418_s4 }
  0x17   :  { %369 = vmatprep.subr.bf16.mxu0 %v442_v1 }
  0x18   :  { %386 = vmatpush3.bf16.msra.mxu1 %v414_v18  ;;  %p425_p3 = por %p424_p2, %p423_p1 }
  0x19   :  { %387 = vmatprep.subr.bf16.mxu1 %v442_v1 }
  0x1a   :  { %370 = vmatpush3.bf16.msra.mxu0 %v408_v16  ;;  %p426_p4 = pnand %p425_p3, %p419_p0 }
  0x1b   :  { %371 = vmatprep.subr.bf16.mxu0 %v442_v1 }
  0x1c   :  { %388 = vmatpush3.bf16.msra.mxu1 %v415_v22 }
  0x1d   :  { %389 = vmatprep.subr.bf16.mxu1 %v442_v1 }
  0x1e   :  { %372 = vmatpush3.bf16.msra.mxu0 %v409_v21 }
  0x20   :  { %390 = vmatpush3.bf16.msra.mxu1 %v416_v24 }
  0x21   :  { %374 = vmatmul.mubr.bf16.vlgmr.msra.gmra.mrb[0].mxu0 %v52_v23  ;;  %391 = vmatprep.subr.bf16.mxu1 %v442_v1 }
  0x24   :  { %392 = vmatpush3.bf16.msra.mxu1 %v417_v25 }
  0xf4   :  { %v162_v27 = vpop.f32.mrb[0].mxu0 }
  0xf5   :  { %v163_v28 = vadd.f32 %v321_v26, %v162_v27  ;;  %v375_v29 = vpop.f32.mrb[1].mxu0 }
  0xf6   :  { %v165_v30 = vpop.f32.mrb[2].mxu0 }
  0xf7   :  { %v166_v31 = vadd.f32 %v321_v26, %v165_v30  ;;  %v376_v32 = vpop.f32.mrb[3].mxu0  ;;  %v169_v33 = vmax.f32 %v163_v28, 0.0 }
  0xf9   :  { %v170_v34 = vmax.f32 %v166_v31, 0.0 }
  0xfb   :  { %v171_v35 = vpack.c.bf16 %v170_v34, %v169_v33 }
  0xfd   :  { %394 = vmatmul.mubr.bf16.vlgmr.msra.gmra.mrb[0].mxu1 %v171_v35 }
 0x1d0   :  { %v272_v36 = vpop.f32.mrb[0].mxu1 }
 0x1d1   :  { %v290_v38 = vadd.f32 %v272_v36, %v32_v10  ;;  %v395_v39 = vpop.f32.mrb[1].mxu1 }
 0x1d2   :  { %v275_v40 = vpop.f32.mrb[2].mxu1 }
 0x1d3   :  { %v299_v41 = vadd.f32 %v338_v37, %v290_v38  ;;  %v291_v42 = vadd.f32 %v275_v40, %v33_v11  ;;  %v396_v43 = vpop.f32.mrb[3].mxu1 }
 0x1d5   :  { %301 = vst [vmem:[#allocation4] sm:$0xff] %v299_v41  ;;  %v300_v44 = vadd.f32 %v338_v37, %v291_v42 }
 0x1d7   :  { %302 = vst [vmem:[#allocation4 + $0x8] sm:$0xff] %v300_v44 }
 0x1d8   :  { %429 = shalt.err (!%p426_p4)
}
 0x1d9   :  { %s430_s20 = scalar_lea.hbm %s572_s7, 256 }
 0x1da   :  { %p431_p5 = scmp.ne.s32.totalorder %s572_s7, %s430_s20  ;;  %p434_p6 = scmp.lt.u32.totalorder %s430_s20, %s572_s7 }
 0x1dc   :  { %p436_p7 = pnand %p434_p6, %p431_p5 }
 0x1de   :  { %439 = shalt.err (!%p436_p7)
}
 0x1df   :  { %s445_s25 = smov 128   ;;  %s446_s26 = smov 8  }
 0x1e0   :  { %314 = dma.vmem_to_hbm [thread:$0]  %s309_s18, 256, %s572_s7, [#allocation5], %s445_s25, %s445_s25, %s446_s26  }
 0x1e1   :  { %440 = dma.done.wait [#allocation5], 256  }
 0x1e2   :  { %441 = vsyncadd [#allocation5], 4294967040 }
 0x1e3   :  { %318 = vsyncpa [#allocation5], 1 }

</bundles_post_ra>
